<compile_context>
chip_gen: v7x
topology: tpu7x:2x2x1
jax: 0.10.0
libtpu: 0.0.40
codegen_flags: <defaults>
</compile_context>

<pallas_src>
import functools

import jax
import jax.numpy as jnp
from jax.experimental import pallas as pl
from jax.experimental.pallas import tpu as pltpu


# --------------------------------------------------------------------------- #
# Kernel
# --------------------------------------------------------------------------- #
def _subpixel_conv_kernel(top_ref, body_ref, bot_ref, w_ref, b_ref, o_ref, *,
                          weight_resident):
    """One grid step: one batch element, one low-res row strip, one OC tile.

    top_ref : (1, Wp+2, IC)          one halo row above the strip (bf16)
    body_ref: (th, Wp+2, IC)         the strip itself (bf16, no duplication)
    bot_ref : (1, Wp+2, IC)          one halo row below the strip (bf16)
    w_ref   : (n_oc|1, 16, IC, toc)  pre-summed sub-pixel weights (bf16);
                                     axis1 index = 4*(2a+b) + (2dh+dw)
    b_ref   : (n_oc, 1, toc)         bias (f32), resident
    o_ref   : (1, 4, th*Wp, toc)     4 output parities, flattened spatial axis
    """
    th = body_ref.shape[0]
    wp2 = body_ref.shape[1]
    ic = body_ref.shape[2]
    wp = wp2 - 2
    m = th * wp
    del ic  # (kept for readability)

    oc_idx = pl.program_id(2)
    w_idx = oc_idx if weight_resident else 0

    # Assemble the haloed (th+2)-row low-res strip once in VMEM (cheap copy,
    # slowest axis concat -> no lane/sublane shuffles).
    xcat = jnp.concatenate([top_ref[...], body_ref[...], bot_ref[...]], axis=0)

    bias = b_ref[oc_idx].astype(jnp.float32)                    # (1, toc)

    # Four output parities; each is the sum of four 1x1 taps on shifted
    # low-res patches.  Taps are value-accumulated (no scratch RMW) and stored
    # once per parity (lane-dense vst, toc multiple of 128).
    # TODO(synk): optionally fuse the 4 taps into one (m, 4*IC) x (4*IC, toc)
    # matmul when IC is a multiple of 128 (lane-aligned concat).
    for a in range(2):
        for b in range(2):
            p = 2 * a + b
            acc = None
            for dh in range(2):
                for dw in range(2):
                    patch = xcat[a + dh:a + dh + th,
                                 b + dw:b + dw + wp, :].reshape(m, xcat.shape[-1])
                    contrib = jnp.dot(
                        patch, w_ref[w_idx, 4 * p + 2 * dh + dw],
                        preferred_element_type=jnp.float32)
                    acc = contrib if acc is None else acc + contrib
            o_ref[0, p] = (acc + bias).astype(o_ref.dtype)


# --------------------------------------------------------------------------- #
# Generation-aware tile / VMEM budgeting
# --------------------------------------------------------------------------- #
def _vmem_capacity_bytes():
    try:
        info = pltpu.get_tpu_info()
        cap = getattr(info, "vmem_capacity_bytes", None)
        if cap:
            return int(cap)
    except Exception:
        pass
    return 64 << 20  # conservative: v7x per-TensorCore VMEM


def _prefer_wide_oc():
    """True on chips with a 256-wide MXU (v6e / v7x); False on v5e-class."""
    try:
        kind = jax.devices()[0].device_kind.lower()
        for tag in ("v5 lite", "v5lite", "v5e", "v4", "v3", "v2"):
            if tag in kind:
                return False
    except Exception:
        pass
    return True


def _choose_tiles(H, Wp, IC, OCp, N, out_itemsize, vmem_cap, prefer_wide):
    """Pick (strip height th, OC tile toc, weight residency, vmem_limit)."""
    bf = 2  # bf16 bytes
    headroom = 8 << 20
    target = max(vmem_cap - headroom, 16 << 20)

    def need(th, toc, resident):
        m = th * Wp
        in_blk = th * (Wp + 2) * IC * bf
        halo = 2 * (Wp + 2) * IC * bf
        w_b = (16 * IC * OCp * bf) if resident else (16 * IC * toc * bf)
        out_blk = 4 * m * toc * out_itemsize
        bias_b = OCp * 4
        temps = ((th + 2) * (Wp + 2) * IC * bf      # xcat
                 + 3 * m * IC * bf                  # live shifted patches
                 + 2 * m * toc * 4)                 # f32 acc temporaries
        return 2 * (in_blk + halo + w_b + out_blk + bias_b) + temps

    # Weight residency: full pre-summed weight (double-buffer counted) must use
    # at most ~1/3 of usable VMEM.
    resident = (2 * 16 * IC * OCp * bf) <= target // 3

    toc_opts = [256, 128] if (prefer_wide and OCp % 256 == 0) else [128]
    th_opts = [t for t in (32, 16, 8, 4, 2, 1) if t <= max(H, 1)] or [1]

    best = None
    for toc in toc_opts:
        for th in th_opts:
            n_strips = pl.cdiv(H, th)
            waste = n_strips * th - H
            if waste * 4 > H and th != th_opts[-1]:
                continue  # too much ragged-H padding; try a smaller strip
            if need(th, toc, resident) <= target:
                best = (th, toc, resident)
                break
        if best is not None:
            break
    if best is None:
        best = (th_opts[-1], 128, False)
    th, toc, resident = best

    # Megacore (v7x has 2 TensorCores): keep the parallel extent even.
    if th > 1 and (N * pl.cdiv(H, th)) % 2 == 1:
        th2 = th // 2
        if (N * pl.cdiv(H, th2)) % 2 == 0 and need(th2, toc, resident) <= target:
            th = th2

    need_b = need(th, toc, resident)
    vmem_limit = max(need_b * 5 // 4, 32 << 20)
    vmem_limit = int(min(vmem_limit, max(vmem_cap - (2 << 20), 32 << 20)))
    return th, toc, resident, vmem_limit


# --------------------------------------------------------------------------- #
# Wrapper (Upsample.forward equivalent, NCHW in / NCHW out)
# --------------------------------------------------------------------------- #
def upsample_forward(x_nchw, weight_oihw, bias, *, with_conv=True,
                     compute_dtype=jnp.bfloat16):
    N, IC, H, W = x_nchw.shape

    if not with_conv:
        # Pure nearest-neighbour 2x upsample: trivial memory op, left to XLA.
        return jnp.repeat(jnp.repeat(x_nchw, 2, axis=2), 2, axis=3)

    OC = weight_oihw.shape[0]
    out_dtype = x_nchw.dtype
    out_itemsize = jnp.dtype(out_dtype).itemsize

    OCp = max(((OC + 127) // 128) * 128, 128)      # lane-dense OC
    Wp = ((W + 7) // 8) * 8                        # layout-friendly W

    vmem_cap = _vmem_capacity_bytes()
    th, toc, resident, vmem_limit = _choose_tiles(
        H, Wp, IC, OCp, N, out_itemsize, vmem_cap, _prefer_wide_oc())
    n_strips = pl.cdiv(H, th)
    Hp = n_strips * th
    n_oc = OCp // toc
    m_blk = th * Wp

    # ---- low-res input glue: NHWC, conv/ragged padding, bf16 cast ----------
    x_nhwc = jnp.transpose(x_nchw, (0, 2, 3, 1)).astype(compute_dtype)
    x_padw = jnp.pad(x_nhwc, ((0, 0), (0, Hp - H), (1, 1 + Wp - W), (0, 0)))
    # Body: non-overlapping th-row strips (no gather, no duplication).
    x_body = x_padw.reshape(N * Hp, Wp + 2, IC)
    # Halos: one low-res row above/below each strip (zeros at image borders) —
    # ~2/th of the input, built with cheap strided slices.
    zrow = jnp.zeros((N, 1, Wp + 2, IC), compute_dtype)
    top = jnp.concatenate([zrow, x_padw[:, th - 1:Hp - 1:th]], axis=1)
    bot = jnp.concatenate([x_padw[:, th:Hp:th], zrow], axis=1)
    top = top.reshape(N * n_strips, Wp + 2, IC)
    bot = bot.reshape(N * n_strips, Wp + 2, IC)

    # ---- sub-pixel weights: fold the nearest-2x upsample into the conv ------
    # Output row 2i+a uses low-res rows (i-1, i) with row weights (k0 | k1+k2)
    # for a=0, and rows (i, i+1) with (k0+k1 | k2) for a=1; same along W.
    w_hwio = jnp.transpose(weight_oihw, (2, 3, 1, 0)).astype(jnp.float32)
    G = jnp.array([[[1., 0.], [0., 1.], [0., 1.]],
                   [[1., 0.], [1., 0.], [0., 1.]]], dtype=jnp.float32)  # [parity,k,tap]
    w_eff = jnp.einsum("apd,bqe,pqio->abdeio", G, G, w_hwio)   # (2,2,2,2,IC,OC)
    w_eff = w_eff.reshape(16, IC, OC)                          # idx = 4*(2a+b)+(2dh+dw)
    w_eff = jnp.pad(w_eff, ((0, 0), (0, 0), (0, OCp - OC)))
    w_eff = w_eff.reshape(16, IC, n_oc, toc).transpose(2, 0, 1, 3)   # (n_oc,16,IC,toc)
    w_eff = w_eff.astype(compute_dtype)
    b_pad = jnp.pad(bias.astype(jnp.float32), (0, OCp - OC)).reshape(n_oc, 1, toc)

    if resident:
        w_spec = pl.BlockSpec((n_oc, 16, IC, toc), lambda n, s, o: (0, 0, 0, 0))
    else:
        w_spec = pl.BlockSpec((1, 16, IC, toc), lambda n, s, o: (o, 0, 0, 0))

    out_flat = pl.pallas_call(
        functools.partial(_subpixel_conv_kernel, weight_resident=resident),
        out_shape=jax.ShapeDtypeStruct((N, 4, Hp * Wp, OCp), out_dtype),
        grid_spec=pltpu.PrefetchScalarGridSpec(
            num_scalar_prefetch=0,
            grid=(N, n_strips, n_oc),
            in_specs=[
                pl.BlockSpec((1, Wp + 2, IC),
                             lambda n, s, o: (n * n_strips + s, 0, 0)),
                pl.BlockSpec((th, Wp + 2, IC),
                             lambda n, s, o: (n * n_strips + s, 0, 0)),
                pl.BlockSpec((1, Wp + 2, IC),
                             lambda n, s, o: (n * n_strips + s, 0, 0)),
                w_spec,
                pl.BlockSpec((n_oc, 1, toc), lambda n, s, o: (0, 0, 0)),
            ],
            out_specs=pl.BlockSpec((1, 4, m_blk, toc),
                                   lambda n, s, o: (n, 0, s, o)),
        ),
        compiler_params=pltpu.CompilerParams(
            dimension_semantics=("parallel", "parallel", "arbitrary"),
            vmem_limit_bytes=vmem_limit),
    )(top, x_body, bot, w_eff, b_pad)

    # (N, 4, Hp*Wp, OCp) -> (N, a, b, Hp, Wp, OCp): contiguous reshape (free);
    # the slice is fused into the single transpose copy by XLA.
    # TODO(synk): in a full pipeline keep the parity/NHWC layout end-to-end and
    # fold this NCHW transpose into the consumer's input BlockSpec instead.
    out6 = out_flat.reshape(N, 2, 2, Hp, Wp, OCp)[:, :, :, :H, :W, :OC]
    out_nchw = jnp.transpose(out6, (0, 5, 3, 1, 4, 2)).reshape(N, OC, 2 * H, 2 * W)
    return out_nchw


# --------------------------------------------------------------------------- #
# Reference + self-test
# --------------------------------------------------------------------------- #
def _reference(x_nchw, weight_oihw, bias):
    x_up = jnp.repeat(jnp.repeat(x_nchw, 2, axis=2), 2, axis=3)
    out = jax.lax.conv_general_dilated(
        x_up.astype(jnp.float32), weight_oihw.astype(jnp.float32),
        window_strides=(1, 1), padding=((1, 1), (1, 1)),
        dimension_numbers=("NCHW", "OIHW", "NCHW"))
    return out + bias.reshape(1, -1, 1, 1)


if __name__ == "__main__":
    key = jax.random.PRNGKey(0)
    k_x, k_w, k_b = jax.random.split(key, 3)

    N, IC, OC, H, W = 2, 4, 4, 16, 16
    x = jax.random.normal(k_x, (N, IC, H, W), dtype=jnp.float32)
    # Deterministic synthetic Conv2d params (shape-compatible with nn.Conv2d(IC, OC, 3)).
    fan_in = IC * 3 * 3
    bound = 1.0 / (fan_in ** 0.5)
    weight = jax.random.uniform(k_w, (OC, IC, 3, 3), jnp.float32, -bound, bound)
    bias_p = jax.random.uniform(k_b, (OC,), jnp.float32, -bound, bound)

    fwd = jax.jit(functools.partial(upsample_forward, with_conv=True))
    out = jax.block_until_ready(fwd(x, weight, bias_p))
    ref = jax.block_until_ready(_reference(x, weight, bias_p))

    assert out.shape == (N, OC, 2 * H, 2 * W), out.shape
    err = float(jnp.max(jnp.abs(out - ref)))
    # bf16 MXU operands with f32 accumulation -> ~1e-2 tolerance.
    assert err < 3e-2, f"max abs err {err}"

    print("KERNEL_OK")
</pallas_src>

<mosaic_0001>
module attributes {stable_mosaic.version = 11 : i64} {
  func.func @_subpixel_conv_kernel(%arg0: i32, %arg1: i32, %arg2: i32, %arg3: memref<1x18x4xbf16, #tpu.memory_space<vmem>>, %arg4: memref<16x18x4xbf16, #tpu.memory_space<vmem>>, %arg5: memref<1x18x4xbf16, #tpu.memory_space<vmem>>, %arg6: memref<1x16x4x128xbf16, #tpu.memory_space<vmem>>, %arg7: memref<1x1x128xf32, #tpu.memory_space<vmem>>, %arg8: memref<1x4x256x128xf32, #tpu.memory_space<vmem>>) attributes {dimension_semantics = [#tpu.dimension_semantics<parallel>, #tpu.dimension_semantics<parallel>, #tpu.dimension_semantics<arbitrary>], iteration_bounds = array<i64: 2, 1, 1>, scalar_prefetch = 0 : i64, scratch_operands = 0 : i64, tpu.core_type = #tpu.core_type<tc>, window_params = [{transform_indices = @transform_0, window_bounds = array<i64: 1, 18, 4>}, {transform_indices = @transform_1, window_bounds = array<i64: 16, 18, 4>}, {transform_indices = @transform_2, window_bounds = array<i64: 1, 18, 4>}, {pipeline_mode = #tpu.pipeline_mode<synchronous>, transform_indices = @transform_3, window_bounds = array<i64: 1, 16, 4, 128>}, {pipeline_mode = #tpu.pipeline_mode<synchronous>, transform_indices = @transform_4, window_bounds = array<i64: 1, 1, 128>}, {transform_indices = @transform_5, window_bounds = array<i64: 1, 4, 256, 128>}]} {
    %c0 = arith.constant 0 : index
    %c0_0 = arith.constant 0 : index
    %c0_1 = arith.constant 0 : index
    %0 = vector.load %arg3[%c0, %c0_0, %c0_1] : memref<1x18x4xbf16, #tpu.memory_space<vmem>>, vector<1x18x4xbf16>
    %c0_2 = arith.constant 0 : index
    %c0_3 = arith.constant 0 : index
    %c0_4 = arith.constant 0 : index
    %1 = vector.load %arg4[%c0_2, %c0_3, %c0_4] : memref<16x18x4xbf16, #tpu.memory_space<vmem>>, vector<16x18x4xbf16>
    %c0_5 = arith.constant 0 : index
    %c0_6 = arith.constant 0 : index
    %c0_7 = arith.constant 0 : index
    %2 = vector.load %arg5[%c0_5, %c0_6, %c0_7] : memref<1x18x4xbf16, #tpu.memory_space<vmem>>, vector<1x18x4xbf16>
    %3 = tpu.concatenate %0, %1, %2 in 0 : vector<1x18x4xbf16>, vector<16x18x4xbf16>, vector<1x18x4xbf16> -> vector<18x18x4xbf16>
    %4 = arith.index_cast %arg2 : i32 to index
    %c0_8 = arith.constant 0 : index
    %c0_9 = arith.constant 0 : index
    %5 = vector.load %arg7[%4, %c0_8, %c0_9] : memref<1x1x128xf32, #tpu.memory_space<vmem>>, vector<1x1x128xf32>
    %6 = vector.shape_cast %5 : vector<1x1x128xf32> to vector<1x128xf32>
    %7 = vector.extract_strided_slice %3 {offsets = [0, 0, 0], sizes = [16, 16, 4], strides = [1, 1, 1]} : vector<18x18x4xbf16> to vector<16x16x4xbf16>
    %8 = vector.shape_cast %7 : vector<16x16x4xbf16> to vector<256x4xbf16>
    %9 = arith.index_cast %arg2 : i32 to index
    %c0_10 = arith.constant 0 : index
    %c0_11 = arith.constant 0 : index
    %c0_12 = arith.constant 0 : index
    %10 = vector.load %arg6[%9, %c0_10, %c0_11, %c0_12] : memref<1x16x4x128xbf16, #tpu.memory_space<vmem>>, vector<1x1x4x128xbf16>
    %11 = vector.shape_cast %10 : vector<1x1x4x128xbf16> to vector<4x128xbf16>
    %cst = arith.constant dense<0.000000e+00> : vector<256x128xf32>
    %12 = tpu.matmul %8, %11, %cst {dimension_numbers = #tpu.dot_dimension_numbers<[1], [0], [0], [1], [0, 0, 1, 1], [], []>} : vector<256x4xbf16>, vector<4x128xbf16>, vector<256x128xf32> -> vector<256x128xf32>
    %13 = vector.extract_strided_slice %3 {offsets = [0, 1, 0], sizes = [16, 16, 4], strides = [1, 1, 1]} : vector<18x18x4xbf16> to vector<16x16x4xbf16>
    %14 = vector.shape_cast %13 : vector<16x16x4xbf16> to vector<256x4xbf16>
    %15 = arith.index_cast %arg2 : i32 to index
    %c1 = arith.constant 1 : index
    %c0_13 = arith.constant 0 : index
    %c0_14 = arith.constant 0 : index
    %16 = vector.load %arg6[%15, %c1, %c0_13, %c0_14] : memref<1x16x4x128xbf16, #tpu.memory_space<vmem>>, vector<1x1x4x128xbf16>
    %17 = vector.shape_cast %16 : vector<1x1x4x128xbf16> to vector<4x128xbf16>
    %cst_15 = arith.constant dense<0.000000e+00> : vector<256x128xf32>
    %18 = tpu.matmul %14, %17, %cst_15 {dimension_numbers = #tpu.dot_dimension_numbers<[1], [0], [0], [1], [0, 0, 1, 1], [], []>} : vector<256x4xbf16>, vector<4x128xbf16>, vector<256x128xf32> -> vector<256x128xf32>
    %19 = arith.addf %12, %18 : vector<256x128xf32>
    %20 = vector.extract_strided_slice %3 {offsets = [1, 0, 0], sizes = [16, 16, 4], strides = [1, 1, 1]} : vector<18x18x4xbf16> to vector<16x16x4xbf16>
    %21 = vector.shape_cast %20 : vector<16x16x4xbf16> to vector<256x4xbf16>
    %22 = arith.index_cast %arg2 : i32 to index
    %c2 = arith.constant 2 : index
    %c0_16 = arith.constant 0 : index
    %c0_17 = arith.constant 0 : index
    %23 = vector.load %arg6[%22, %c2, %c0_16, %c0_17] : memref<1x16x4x128xbf16, #tpu.memory_space<vmem>>, vector<1x1x4x128xbf16>
    %24 = vector.shape_cast %23 : vector<1x1x4x128xbf16> to vector<4x128xbf16>
    %cst_18 = arith.constant dense<0.000000e+00> : vector<256x128xf32>
    %25 = tpu.matmul %21, %24, %cst_18 {dimension_numbers = #tpu.dot_dimension_numbers<[1], [0], [0], [1], [0, 0, 1, 1], [], []>} : vector<256x4xbf16>, vector<4x128xbf16>, vector<256x128xf32> -> vector<256x128xf32>
    %26 = arith.addf %19, %25 : vector<256x128xf32>
    %27 = vector.extract_strided_slice %3 {offsets = [1, 1, 0], sizes = [16, 16, 4], strides = [1, 1, 1]} : vector<18x18x4xbf16> to vector<16x16x4xbf16>
    %28 = vector.shape_cast %27 : vector<16x16x4xbf16> to vector<256x4xbf16>
    %29 = arith.index_cast %arg2 : i32 to index
    %c3 = arith.constant 3 : index
    %c0_19 = arith.constant 0 : index
    %c0_20 = arith.constant 0 : index
    %30 = vector.load %arg6[%29, %c3, %c0_19, %c0_20] : memref<1x16x4x128xbf16, #tpu.memory_space<vmem>>, vector<1x1x4x128xbf16>
    %31 = vector.shape_cast %30 : vector<1x1x4x128xbf16> to vector<4x128xbf16>
    %cst_21 = arith.constant dense<0.000000e+00> : vector<256x128xf32>
    %32 = tpu.matmul %28, %31, %cst_21 {dimension_numbers = #tpu.dot_dimension_numbers<[1], [0], [0], [1], [0, 0, 1, 1], [], []>} : vector<256x4xbf16>, vector<4x128xbf16>, vector<256x128xf32> -> vector<256x128xf32>
    %33 = arith.addf %26, %32 : vector<256x128xf32>
    %34 = vector.broadcast %6 : vector<1x128xf32> to vector<256x128xf32>
    %35 = arith.addf %33, %34 : vector<256x128xf32>
    %c0_22 = arith.constant 0 : index
    %c0_23 = arith.constant 0 : index
    %c0_24 = arith.constant 0 : index
    %c0_25 = arith.constant 0 : index
    %36 = vector.load %arg8[%c0_22, %c0_23, %c0_24, %c0_25] : memref<1x4x256x128xf32, #tpu.memory_space<vmem>>, vector<1x1x256x128xf32>
    %37 = vector.shape_cast %36 : vector<1x1x256x128xf32> to vector<256x128xf32>
    %38 = vector.shape_cast %35 : vector<256x128xf32> to vector<1x1x256x128xf32>
    tpu.vector_store %arg8[%c0_22, %c0_23, %c0_24, %c0_25], %38 {strides = array<i32>} : memref<1x4x256x128xf32, #tpu.memory_space<vmem>>, vector<1x1x256x128xf32>,
    %39 = vector.extract_strided_slice %3 {offsets = [0, 1, 0], sizes = [16, 16, 4], strides = [1, 1, 1]} : vector<18x18x4xbf16> to vector<16x16x4xbf16>
    %40 = vector.shape_cast %39 : vector<16x16x4xbf16> to vector<256x4xbf16>
    %41 = arith.index_cast %arg2 : i32 to index
    %c4 = arith.constant 4 : index
    %c0_26 = arith.constant 0 : index
    %c0_27 = arith.constant 0 : index
    %42 = vector.load %arg6[%41, %c4, %c0_26, %c0_27] : memref<1x16x4x128xbf16, #tpu.memory_space<vmem>>, vector<1x1x4x128xbf16>
    %43 = vector.shape_cast %42 : vector<1x1x4x128xbf16> to vector<4x128xbf16>
    %cst_28 = arith.constant dense<0.000000e+00> : vector<256x128xf32>
    %44 = tpu.matmul %40, %43, %cst_28 {dimension_numbers = #tpu.dot_dimension_numbers<[1], [0], [0], [1], [0, 0, 1, 1], [], []>} : vector<256x4xbf16>, vector<4x128xbf16>, vector<256x128xf32> -> vector<256x128xf32>
    %45 = vector.extract_strided_slice %3 {offsets = [0, 2, 0], sizes = [16, 16, 4], strides = [1, 1, 1]} : vector<18x18x4xbf16> to vector<16x16x4xbf16>
    %46 = vector.shape_cast %45 : vector<16x16x4xbf16> to vector<256x4xbf16>
    %47 = arith.index_cast %arg2 : i32 to index
    %c5 = arith.constant 5 : index
    %c0_29 = arith.constant 0 : index
    %c0_30 = arith.constant 0 : index
    %48 = vector.load %arg6[%47, %c5, %c0_29, %c0_30] : memref<1x16x4x128xbf16, #tpu.memory_space<vmem>>, vector<1x1x4x128xbf16>
    %49 = vector.shape_cast %48 : vector<1x1x4x128xbf16> to vector<4x128xbf16>
    %cst_31 = arith.constant dense<0.000000e+00> : vector<256x128xf32>
    %50 = tpu.matmul %46, %49, %cst_31 {dimension_numbers = #tpu.dot_dimension_numbers<[1], [0], [0], [1], [0, 0, 1, 1], [], []>} : vector<256x4xbf16>, vector<4x128xbf16>, vector<256x128xf32> -> vector<256x128xf32>
    %51 = arith.addf %44, %50 : vector<256x128xf32>
    %52 = vector.extract_strided_slice %3 {offsets = [1, 1, 0], sizes = [16, 16, 4], strides = [1, 1, 1]} : vector<18x18x4xbf16> to vector<16x16x4xbf16>
    %53 = vector.shape_cast %52 : vector<16x16x4xbf16> to vector<256x4xbf16>
    %54 = arith.index_cast %arg2 : i32 to index
    %c6 = arith.constant 6 : index
    %c0_32 = arith.constant 0 : index
    %c0_33 = arith.constant 0 : index
    %55 = vector.load %arg6[%54, %c6, %c0_32, %c0_33] : memref<1x16x4x128xbf16, #tpu.memory_space<vmem>>, vector<1x1x4x128xbf16>
    %56 = vector.shape_cast %55 : vector<1x1x4x128xbf16> to vector<4x128xbf16>
    %cst_34 = arith.constant dense<0.000000e+00> : vector<256x128xf32>
    %57 = tpu.matmul %53, %56, %cst_34 {dimension_numbers = #tpu.dot_dimension_numbers<[1], [0], [0], [1], [0, 0, 1, 1], [], []>} : vector<256x4xbf16>, vector<4x128xbf16>, vector<256x128xf32> -> vector<256x128xf32>
    %58 = arith.addf %51, %57 : vector<256x128xf32>
    %59 = vector.extract_strided_slice %3 {offsets = [1, 2, 0], sizes = [16, 16, 4], strides = [1, 1, 1]} : vector<18x18x4xbf16> to vector<16x16x4xbf16>
    %60 = vector.shape_cast %59 : vector<16x16x4xbf16> to vector<256x4xbf16>
    %61 = arith.index_cast %arg2 : i32 to index
    %c7 = arith.constant 7 : index
    %c0_35 = arith.constant 0 : index
    %c0_36 = arith.constant 0 : index
    %62 = vector.load %arg6[%61, %c7, %c0_35, %c0_36] : memref<1x16x4x128xbf16, #tpu.memory_space<vmem>>, vector<1x1x4x128xbf16>
    %63 = vector.shape_cast %62 : vector<1x1x4x128xbf16> to vector<4x128xbf16>
    %cst_37 = arith.constant dense<0.000000e+00> : vector<256x128xf32>
    %64 = tpu.matmul %60, %63, %cst_37 {dimension_numbers = #tpu.dot_dimension_numbers<[1], [0], [0], [1], [0, 0, 1, 1], [], []>} : vector<256x4xbf16>, vector<4x128xbf16>, vector<256x128xf32> -> vector<256x128xf32>
    %65 = arith.addf %58, %64 : vector<256x128xf32>
    %66 = vector.broadcast %6 : vector<1x128xf32> to vector<256x128xf32>
    %67 = arith.addf %65, %66 : vector<256x128xf32>
    %c0_38 = arith.constant 0 : index
    %c1_39 = arith.constant 1 : index
    %c0_40 = arith.constant 0 : index
    %c0_41 = arith.constant 0 : index
    %68 = vector.load %arg8[%c0_38, %c1_39, %c0_40, %c0_41] : memref<1x4x256x128xf32, #tpu.memory_space<vmem>>, vector<1x1x256x128xf32>
    %69 = vector.shape_cast %68 : vector<1x1x256x128xf32> to vector<256x128xf32>
    %70 = vector.shape_cast %67 : vector<256x128xf32> to vector<1x1x256x128xf32>
    tpu.vector_store %arg8[%c0_38, %c1_39, %c0_40, %c0_41], %70 {strides = array<i32>} : memref<1x4x256x128xf32, #tpu.memory_space<vmem>>, vector<1x1x256x128xf32>,
    %71 = vector.extract_strided_slice %3 {offsets = [1, 0, 0], sizes = [16, 16, 4], strides = [1, 1, 1]} : vector<18x18x4xbf16> to vector<16x16x4xbf16>
    %72 = vector.shape_cast %71 : vector<16x16x4xbf16> to vector<256x4xbf16>
    %73 = arith.index_cast %arg2 : i32 to index
    %c8 = arith.constant 8 : index
    %c0_42 = arith.constant 0 : index
    %c0_43 = arith.constant 0 : index
    %74 = vector.load %arg6[%73, %c8, %c0_42, %c0_43] : memref<1x16x4x128xbf16, #tpu.memory_space<vmem>>, vector<1x1x4x128xbf16>
    %75 = vector.shape_cast %74 : vector<1x1x4x128xbf16> to vector<4x128xbf16>
    %cst_44 = arith.constant dense<0.000000e+00> : vector<256x128xf32>
    %76 = tpu.matmul %72, %75, %cst_44 {dimension_numbers = #tpu.dot_dimension_numbers<[1], [0], [0], [1], [0, 0, 1, 1], [], []>} : vector<256x4xbf16>, vector<4x128xbf16>, vector<256x128xf32> -> vector<256x128xf32>
    %77 = vector.extract_strided_slice %3 {offsets = [1, 1, 0], sizes = [16, 16, 4], strides = [1, 1, 1]} : vector<18x18x4xbf16> to vector<16x16x4xbf16>
    %78 = vector.shape_cast %77 : vector<16x16x4xbf16> to vector<256x4xbf16>
    %79 = arith.index_cast %arg2 : i32 to index
    %c9 = arith.constant 9 : index
    %c0_45 = arith.constant 0 : index
    %c0_46 = arith.constant 0 : index
    %80 = vector.load %arg6[%79, %c9, %c0_45, %c0_46] : memref<1x16x4x128xbf16, #tpu.memory_space<vmem>>, vector<1x1x4x128xbf16>
    %81 = vector.shape_cast %80 : vector<1x1x4x128xbf16> to vector<4x128xbf16>
    %cst_47 = arith.constant dense<0.000000e+00> : vector<256x128xf32>
    %82 = tpu.matmul %78, %81, %cst_47 {dimension_numbers = #tpu.dot_dimension_numbers<[1], [0], [0], [1], [0, 0, 1, 1], [], []>} : vector<256x4xbf16>, vector<4x128xbf16>, vector<256x128xf32> -> vector<256x128xf32>
    %83 = arith.addf %76, %82 : vector<256x128xf32>
    %84 = vector.extract_strided_slice %3 {offsets = [2, 0, 0], sizes = [16, 16, 4], strides = [1, 1, 1]} : vector<18x18x4xbf16> to vector<16x16x4xbf16>
    %85 = vector.shape_cast %84 : vector<16x16x4xbf16> to vector<256x4xbf16>
    %86 = arith.index_cast %arg2 : i32 to index
    %c10 = arith.constant 10 : index
    %c0_48 = arith.constant 0 : index
    %c0_49 = arith.constant 0 : index
    %87 = vector.load %arg6[%86, %c10, %c0_48, %c0_49] : memref<1x16x4x128xbf16, #tpu.memory_space<vmem>>, vector<1x1x4x128xbf16>
    %88 = vector.shape_cast %87 : vector<1x1x4x128xbf16> to vector<4x128xbf16>
    %cst_50 = arith.constant dense<0.000000e+00> : vector<256x128xf32>
    %89 = tpu.matmul %85, %88, %cst_50 {dimension_numbers = #tpu.dot_dimension_numbers<[1], [0], [0], [1], [0, 0, 1, 1], [], []>} : vector<256x4xbf16>, vector<4x128xbf16>, vector<256x128xf32> -> vector<256x128xf32>
    %90 = arith.addf %83, %89 : vector<256x128xf32>
    %91 = vector.extract_strided_slice %3 {offsets = [2, 1, 0], sizes = [16, 16, 4], strides = [1, 1, 1]} : vector<18x18x4xbf16> to vector<16x16x4xbf16>
    %92 = vector.shape_cast %91 : vector<16x16x4xbf16> to vector<256x4xbf16>
    %93 = arith.index_cast %arg2 : i32 to index
    %c11 = arith.constant 11 : index
    %c0_51 = arith.constant 0 : index
    %c0_52 = arith.constant 0 : index
    %94 = vector.load %arg6[%93, %c11, %c0_51, %c0_52] : memref<1x16x4x128xbf16, #tpu.memory_space<vmem>>, vector<1x1x4x128xbf16>
    %95 = vector.shape_cast %94 : vector<1x1x4x128xbf16> to vector<4x128xbf16>
    %cst_53 = arith.constant dense<0.000000e+00> : vector<256x128xf32>
    %96 = tpu.matmul %92, %95, %cst_53 {dimension_numbers = #tpu.dot_dimension_numbers<[1], [0], [0], [1], [0, 0, 1, 1], [], []>} : vector<256x4xbf16>, vector<4x128xbf16>, vector<256x128xf32> -> vector<256x128xf32>
    %97 = arith.addf %90, %96 : vector<256x128xf32>
    %98 = vector.broadcast %6 : vector<1x128xf32> to vector<256x128xf32>
    %99 = arith.addf %97, %98 : vector<256x128xf32>
    %c0_54 = arith.constant 0 : index
    %c2_55 = arith.constant 2 : index
    %c0_56 = arith.constant 0 : index
    %c0_57 = arith.constant 0 : index
    %100 = vector.load %arg8[%c0_54, %c2_55, %c0_56, %c0_57] : memref<1x4x256x128xf32, #tpu.memory_space<vmem>>, vector<1x1x256x128xf32>
    %101 = vector.shape_cast %100 : vector<1x1x256x128xf32> to vector<256x128xf32>
    %102 = vector.shape_cast %99 : vector<256x128xf32> to vector<1x1x256x128xf32>
    tpu.vector_store %arg8[%c0_54, %c2_55, %c0_56, %c0_57], %102 {strides = array<i32>} : memref<1x4x256x128xf32, #tpu.memory_space<vmem>>, vector<1x1x256x128xf32>,
    %103 = vector.extract_strided_slice %3 {offsets = [1, 1, 0], sizes = [16, 16, 4], strides = [1, 1, 1]} : vector<18x18x4xbf16> to vector<16x16x4xbf16>
    %104 = vector.shape_cast %103 : vector<16x16x4xbf16> to vector<256x4xbf16>
    %105 = arith.index_cast %arg2 : i32 to index
    %c12 = arith.constant 12 : index
    %c0_58 = arith.constant 0 : index
    %c0_59 = arith.constant 0 : index
    %106 = vector.load %arg6[%105, %c12, %c0_58, %c0_59] : memref<1x16x4x128xbf16, #tpu.memory_space<vmem>>, vector<1x1x4x128xbf16>
    %107 = vector.shape_cast %106 : vector<1x1x4x128xbf16> to vector<4x128xbf16>
    %cst_60 = arith.constant dense<0.000000e+00> : vector<256x128xf32>
    %108 = tpu.matmul %104, %107, %cst_60 {dimension_numbers = #tpu.dot_dimension_numbers<[1], [0], [0], [1], [0, 0, 1, 1], [], []>} : vector<256x4xbf16>, vector<4x128xbf16>, vector<256x128xf32> -> vector<256x128xf32>
    %109 = vector.extract_strided_slice %3 {offsets = [1, 2, 0], sizes = [16, 16, 4], strides = [1, 1, 1]} : vector<18x18x4xbf16> to vector<16x16x4xbf16>
    %110 = vector.shape_cast %109 : vector<16x16x4xbf16> to vector<256x4xbf16>
    %111 = arith.index_cast %arg2 : i32 to index
    %c13 = arith.constant 13 : index
    %c0_61 = arith.constant 0 : index
    %c0_62 = arith.constant 0 : index
    %112 = vector.load %arg6[%111, %c13, %c0_61, %c0_62] : memref<1x16x4x128xbf16, #tpu.memory_space<vmem>>, vector<1x1x4x128xbf16>
    %113 = vector.shape_cast %112 : vector<1x1x4x128xbf16> to vector<4x128xbf16>
    %cst_63 = arith.constant dense<0.000000e+00> : vector<256x128xf32>
    %114 = tpu.matmul %110, %113, %cst_63 {dimension_numbers = #tpu.dot_dimension_numbers<[1], [0], [0], [1], [0, 0, 1, 1], [], []>} : vector<256x4xbf16>, vector<4x128xbf16>, vector<256x128xf32> -> vector<256x128xf32>
    %115 = arith.addf %108, %114 : vector<256x128xf32>
    %116 = vector.extract_strided_slice %3 {offsets = [2, 1, 0], sizes = [16, 16, 4], strides = [1, 1, 1]} : vector<18x18x4xbf16> to vector<16x16x4xbf16>
    %117 = vector.shape_cast %116 : vector<16x16x4xbf16> to vector<256x4xbf16>
    %118 = arith.index_cast %arg2 : i32 to index
    %c14 = arith.constant 14 : index
    %c0_64 = arith.constant 0 : index
    %c0_65 = arith.constant 0 : index
    %119 = vector.load %arg6[%118, %c14, %c0_64, %c0_65] : memref<1x16x4x128xbf16, #tpu.memory_space<vmem>>, vector<1x1x4x128xbf16>
    %120 = vector.shape_cast %119 : vector<1x1x4x128xbf16> to vector<4x128xbf16>
    %cst_66 = arith.constant dense<0.000000e+00> : vector<256x128xf32>
    %121 = tpu.matmul %117, %120, %cst_66 {dimension_numbers = #tpu.dot_dimension_numbers<[1], [0], [0], [1], [0, 0, 1, 1], [], []>} : vector<256x4xbf16>, vector<4x128xbf16>, vector<256x128xf32> -> vector<256x128xf32>
    %122 = arith.addf %115, %121 : vector<256x128xf32>
    %123 = vector.extract_strided_slice %3 {offsets = [2, 2, 0], sizes = [16, 16, 4], strides = [1, 1, 1]} : vector<18x18x4xbf16> to vector<16x16x4xbf16>
    %124 = vector.shape_cast %123 : vector<16x16x4xbf16> to vector<256x4xbf16>
    %125 = arith.index_cast %arg2 : i32 to index
    %c15 = arith.constant 15 : index
    %c0_67 = arith.constant 0 : index
    %c0_68 = arith.constant 0 : index
    %126 = vector.load %arg6[%125, %c15, %c0_67, %c0_68] : memref<1x16x4x128xbf16, #tpu.memory_space<vmem>>, vector<1x1x4x128xbf16>
    %127 = vector.shape_cast %126 : vector<1x1x4x128xbf16> to vector<4x128xbf16>
    %cst_69 = arith.constant dense<0.000000e+00> : vector<256x128xf32>
    %128 = tpu.matmul %124, %127, %cst_69 {dimension_numbers = #tpu.dot_dimension_numbers<[1], [0], [0], [1], [0, 0, 1, 1], [], []>} : vector<256x4xbf16>, vector<4x128xbf16>, vector<256x128xf32> -> vector<256x128xf32>
    %129 = arith.addf %122, %128 : vector<256x128xf32>
    %130 = vector.broadcast %6 : vector<1x128xf32> to vector<256x128xf32>
    %131 = arith.addf %129, %130 : vector<256x128xf32>
    %c0_70 = arith.constant 0 : index
    %c3_71 = arith.constant 3 : index
    %c0_72 = arith.constant 0 : index
    %c0_73 = arith.constant 0 : index
    %132 = vector.load %arg8[%c0_70, %c3_71, %c0_72, %c0_73] : memref<1x4x256x128xf32, #tpu.memory_space<vmem>>, vector<1x1x256x128xf32>
    %133 = vector.shape_cast %132 : vector<1x1x256x128xf32> to vector<256x128xf32>
    %134 = vector.shape_cast %131 : vector<256x128xf32> to vector<1x1x256x128xf32>
    tpu.vector_store %arg8[%c0_70, %c3_71, %c0_72, %c0_73], %134 {strides = array<i32>} : memref<1x4x256x128xf32, #tpu.memory_space<vmem>>, vector<1x1x256x128xf32>,
    return
  }
  func.func @transform_0(%arg0: i32, %arg1: i32, %arg2: i32) -> (i32, i32, i32) {
    %c1_i32 = arith.constant 1 : i32
    %0 = arith.muli %arg0, %c1_i32 : i32
    %1 = arith.addi %0, %arg1 : i32
    %c0_i32 = arith.constant 0 : i32
    %c0_i32_0 = arith.constant 0 : i32
    %c0_i32_1 = arith.constant 0 : i32
    return %1, %c0_i32, %c0_i32_0 : i32, i32, i32
  }
  func.func @transform_1(%arg0: i32, %arg1: i32, %arg2: i32) -> (i32, i32, i32) {
    %c1_i32 = arith.constant 1 : i32
    %0 = arith.muli %arg0, %c1_i32 : i32
    %1 = arith.addi %0, %arg1 : i32
    %c0_i32 = arith.constant 0 : i32
    %c0_i32_0 = arith.constant 0 : i32
    %c0_i32_1 = arith.constant 0 : i32
    return %1, %c0_i32, %c0_i32_0 : i32, i32, i32
  }
  func.func @transform_2(%arg0: i32, %arg1: i32, %arg2: i32) -> (i32, i32, i32) {
    %c1_i32 = arith.constant 1 : i32
    %0 = arith.muli %arg0, %c1_i32 : i32
    %1 = arith.addi %0, %arg1 : i32
    %c0_i32 = arith.constant 0 : i32
    %c0_i32_0 = arith.constant 0 : i32
    %c0_i32_1 = arith.constant 0 : i32
    return %1, %c0_i32, %c0_i32_0 : i32, i32, i32
  }
  func.func @transform_3(%arg0: i32, %arg1: i32, %arg2: i32) -> (i32, i32, i32, i32) {
    %c0_i32 = arith.constant 0 : i32
    %c0_i32_0 = arith.constant 0 : i32
    %c0_i32_1 = arith.constant 0 : i32
    %c0_i32_2 = arith.constant 0 : i32
    %c0_i32_3 = arith.constant 0 : i32
    return %c0_i32, %c0_i32_0, %c0_i32_1, %c0_i32_2 : i32, i32, i32, i32
  }
  func.func @transform_4(%arg0: i32, %arg1: i32, %arg2: i32) -> (i32, i32, i32) {
    %c0_i32 = arith.constant 0 : i32
    %c0_i32_0 = arith.constant 0 : i32
    %c0_i32_1 = arith.constant 0 : i32
    %c0_i32_2 = arith.constant 0 : i32
    return %c0_i32, %c0_i32_0, %c0_i32_1 : i32, i32, i32
  }
  func.func @transform_5(%arg0: i32, %arg1: i32, %arg2: i32) -> (i32, i32, i32, i32) {
    %c0_i32 = arith.constant 0 : i32
    %c0_i32_0 = arith.constant 0 : i32
    return %arg0, %c0_i32, %arg1, %arg2 : i32, i32, i32, i32
  }
}

</mosaic_0001>

<bundles_post_ra>
// kernel: upsample_forward.1
= control target key start
LH: loop header
LB: loop body
LE: loop exit
PB: predicated region body
PF: predicated region fallthrough
CT: control target
= control target key end

     0   :  { %s6488_s18 = smov 0   ;;  %s6490_s19 = smov 0   ;;  %s7926_s0 = inlined_call_operand.vmem [shape: bf16[2,18,4], index: 0, kind: input, shape index: {}, may-alias: {0,2}]   ;;  %s7927_s1 = inlined_call_operand.vmem [shape: bf16[32,18,4], index: 1, kind: input, shape index: {}]   ;;  %s7928_s2 = inlined_call_operand.vmem [shape: bf16[2,18,4], index: 2, kind: input, shape index: {}, may-alias: {0,2}]   ;;  %s7929_s3 = inlined_call_operand.vmem [shape: bf16[1,16,4,128], index: 3, kind: input, shape index: {}]   ;;  %s7930_s4 = inlined_call_operand.vmem [shape: f32[1,1,128], index: 4, kind: input, shape index: {}]   ;;  %s7931_s5 = inlined_call_operand.vmem [shape: f32[2,4,256,128], index: 5, kind: output, shape index: {}]  }
   0x1   :  { %s6492_s20 = smov 0  }
   0x2 LB: > { %s34_s21 = sadd.s32 1, %s6452_s19  ;;  %p4724_p0 = scmp.ge.s32.totalorder %s6456_s20, 1  ;;  %s6456_s20 = sphi %s6492_s20, %s15_s20   ;;  %s6452_s19 = sphi %s6490_s19, %s8032_s19   ;;  %s6448_s18 = sphi %s6488_s18, %s8031_s18  }
   0x3   : > { %p36_p1 = scmp.ge.s32.totalorder %s34_s21, 2  ;;  %p244_p2 = scmp.lt.s32.totalorder %s6456_s20, 3 }
   0x5   : > { %s8034_s21 = smov (%p36_p1, %s34_s21), 0  ;;  %p245_p3 = pnand %p4724_p0, %p244_p2 }
   0x7   : > { %248 = sbr.rel (%p245_p3) target bundleno = 787 (0x313), region = 40 }
   0xe   : > { %vm878_vm0 = vcmask 1041408   ;;  %v4850_v0 = vld [vmem:[%s7929_s3 + $0xa] sm:$0x3]  ;;  %v4731_v1 = vld [vmem:[%s7929_s3 + $0x2] sm:$0x3]  ;;  %p294_p4 = scmp.lt.s32.totalorder %s6448_s18, 1 }
   0xf   : > { %6378 = vmatprep.subr.msk.bf16.mxu1 %vm878_vm0, %v4850_v0  ;;  %v2079_v2 = vsel %vm878_vm0, %v4850_v0, 0  ;;  %6374 = vmatprep.subr.msk.bf16.mxu0 %vm878_vm0, %v4731_v1  ;;  %s4726_s26 = sshll.u32 %s6448_s18, 4  ;;  %v880_v3 = vsel %vm878_vm0, %v4731_v1, 0  ;;  %vm1863_vm1 = vcmask 1042432   ;;  %vm1864_vm2 = vcmask 1046532  }
  0x10   : > { %5583 = vmatpush3.bf16.msra.mxu1 %v2079_v2  ;;  %s8036_s18 = smov (!%p294_p4, %s6448_s18), 1  ;;  %5447 = vmatpush3.bf16.msra.mxu0 %v880_v3  ;;  %v389_v4 = vld [vmem:[%s7929_s3] sm:$0x3]  ;;  %v4833_v5 = vld [vmem:[%s7929_s3 + $0x8] sm:$0x3]  ;;  %p302_p5 = scmp.lt.s32.totalorder %s4726_s26, 31  ;;  %vm6537_vm3 = vmor %vm1863_vm1, %vm1864_vm2 }
  0x11   : > { %s6390_s6 = smul.u32 12, %s8036_s18  ;;  %6375 = vmatprep.subr.msk.bf16.mxu0 %vm878_vm0, %v389_v4  ;;  %6379 = vmatprep.subr.msk.bf16.mxu1 %vm878_vm0, %v4833_v5  ;;  %vm829_vm4 = vcmask 31744   ;;  %vm390_vm5 = vsmask.f32 3328  ;;  %vm391_vm6 = vsmask.f32 7440 }
  0x12   : > { %s8038_s26 = smov (!%p302_p5, %s4726_s26), 31  ;;  %v6563_v28 = vsel %vm878_vm0, %v389_v4, 0  ;;  %v2243_v29 = vsel %vm878_vm0, %v4833_v5, 0  ;;  %vm6585_vm7 = vmor %vm390_vm5, %vm391_vm6  ;;  %v6609_v3 = vld [vmem:[%s7929_s3 + $0xc] sm:$0x3]  ;;  %s5173_s22 = sshll.u32 %s8036_s18, 10 }
  0x13   : > { %s298_s9 = scalar_lea.vmem %s7926_s0, %s6390_s6  ;;  %s6391_s10 = smul.u32 12, %s8038_s26 }
  0x14   : > { %v6541_v7 = vld [vmem:[%s298_s9] sm:$0xf]  ;;  %v6543_v8 = vld [vmem:[%s298_s9 + $0x4] sm:$0xf]  ;;  %v332_v9 = vld [vmem:[%s298_s9 + $0x8] sm:$0x1]  ;;  %s7521_s27 = scalar_lea.vmem %s7931_s5, %s5173_s22  ;;  %s7552_s30 = scalar_lea.vmem %s7928_s2, %s6390_s6 }
  0x15   : > { %v4834_v10 = vrot.slane %v6541_v7, 9  ;;  %v1868_v11 = vrot.slane %v6543_v8, 5  ;;  %v1871_v13 = vrot.slane %v332_v9, 5  ;;  %v394_v14 = vshrl.u32 %v6541_v7, 16  ;;  %s6560_s13 = scalar_lea.vmem %s7927_s1, %s6391_s10 }
  0x16   : > { %v397_v15 = vshll.u32 %v6541_v7, 16  ;;  %v403_v16 = vshll.u32 %v6543_v8, 16  ;;  %v407_v19 = vshrl.u32 %v6543_v8, 16  ;;  %v413_v20 = vshll.u32 %v332_v9, 16  ;;  %v6567_v30 = vld [vmem:[%s6560_s13] sm:$0xf] }
  0x17   : > { %v1869_v17 = vsel %vm6537_vm3, %v4834_v10, %v1868_v11  ;;  %v1870_v18 = vrot.slane %v1868_v11, 4  ;;  %v396_v21 = vrot.slane %v394_v14, 4  ;;  %v6570_v31 = vld [vmem:[%s6560_s13 + $0x4] sm:$0xf]  ;;  %v335_v32 = vld [vmem:[%s6560_s13 + $0x8] sm:$0x1] }
  0x18   : > { %v399_v22 = vrot.slane %v397_v15, 5  ;;  %v405_v23 = vrot.slane %v403_v16, 5  ;;  %v409_v25 = vrot.slane %v407_v19, 4  ;;  %v415_v27 = vrot.slane %v413_v20, 5  ;;  %v6581_v43 = vld [vmem:[%s6560_s13 + $0xc] sm:$0xf] }
  0x19   : > { %v1872_v24 = vsel %vm6537_vm3, %v1870_v18, %v1871_v13  ;;  %v418_v35 = vshrl.u32 %v6567_v30, 16  ;;  %v421_v36 = vshll.u32 %v6567_v30, 16  ;;  %v427_v37 = vshll.u32 %v6570_v31, 16  ;;  %v6590_v49 = vld [vmem:[%s6560_s13 + $0x10] sm:$0xf] }
  0x1a   : > { %v4851_v26 = vcombine.low %v1869_v17, %v1872_v24  ;;  %v400_v33 = vor.u32 %v399_v22, %v396_v21  ;;  %v410_v34 = vor.u32 %v409_v25, %v405_v23  ;;  %v431_v38 = vshrl.u32 %v6570_v31, 16  ;;  %v338_v2 = vld [vmem:[%s6560_s13 + $0x14] sm:$0x1]  ;;  %v6614_v11 = vld [vmem:[%s6560_s13 + $0x18] sm:$0xf] }
  0x1b   : > { %v437_v39 = vshll.u32 %v335_v32, 16  ;;  %v4835_v40 = vrot.slane %v6567_v30, 9  ;;  %v1875_v41 = vrot.slane %v6570_v31, 5  ;;  %v1878_v42 = vrot.slane %v335_v32, 5  ;;  %v6630_v21 = vld [vmem:[%s6560_s13 + $0x1c] sm:$0xf] }
  0x1c   : > { %5584 = vmatprep.mubr.msk.bf16.mxu1 %vm829_vm4, %v4851_v26  ;;  %v420_v44 = vrot.slane %v418_v35, 4  ;;  %v423_v45 = vrot.slane %v421_v36, 5  ;;  %v429_v46 = vrot.slane %v427_v37, 5  ;;  %v433_v47 = vrot.slane %v431_v38, 4  ;;  %v6636_v26 = vld [vmem:[%s7929_s3 + $0x4] sm:$0x3] }
  0x1d   : > { %v439_v50 = vrot.slane %v437_v39, 5  ;;  %v1876_v51 = vsel %vm6537_vm3, %v4835_v40, %v1875_v41  ;;  %v1877_v52 = vrot.slane %v1875_v41, 4  ;;  %v401_v53 = vrot.slane %v400_v33, 4  ;;  %v341_v35 = vld [vmem:[%s6560_s13 + $0x20] sm:$0x1] }
  0x1e   : > { %v411_v54 = vrot.slane %v410_v34, 4  ;;  %v424_v55 = vor.u32 %v423_v45, %v420_v44  ;;  %v434_v56 = vor.u32 %v433_v47, %v429_v46  ;;  %v442_v57 = vshrl.u32 %v6581_v43, 16  ;;  %v6654_v44 = vld [vmem:[%s6560_s13 + $0x24] sm:$0xf] }
  0x1f   : > { %v1879_v58 = vsel %vm6537_vm3, %v1877_v52, %v1878_v42  ;;  %v406_v59 = vsel %vm6585_vm7, %v401_v53, %v405_v23  ;;  %v445_v60 = vshll.u32 %v6581_v43, 16  ;;  %v451_v61 = vshll.u32 %v6590_v49, 16 }
  0x20   : > { %v6601_v62 = vcombine.low %v1876_v51, %v1879_v58  ;;  %v416_v63 = vsel %vm6585_vm7, %v411_v54, %v415_v27  ;;  %v425_v0 = vrot.slane %v424_v55, 4  ;;  %v435_v1 = vrot.slane %v434_v56, 4  ;;  %v6663_v54 = vld [vmem:[%s6560_s13 + $0x28] sm:$0xf] }
  0x21   : > { %v6611_v4 = vcombine.low %v406_v59, %v416_v63  ;;  %v444_v5 = vrot.slane %v442_v57, 4  ;;  %v447_v9 = vrot.slane %v445_v60, 5  ;;  %v453_v10 = vrot.slane %v451_v61, 5 }
  0x22   : > { %7982 = vst [vmem:[#allocation2_spill] sm:$0xff] %v6601_v62  ;;  %5585 = vmatmul.mubr.msk.bf16.vlgmr.msra.gmra.mrb[0].mxu1 %vm829_vm4, %v6601_v62  ;;  %v430_v13 = vsel %vm6585_vm7, %v425_v0, %v429_v46  ;;  %v440_v14 = vsel %vm6585_vm7, %v435_v1, %v439_v50  ;;  %v455_v15 = vshrl.u32 %v6590_v49, 16  ;;  %v461_v16 = vshll.u32 %v338_v2, 16  ;;  %v344_v1 = vld [vmem:[%s6560_s13 + $0x2c] sm:$0x1] }
  0x23   : > { %5448 = vmatprep.mubr.msk.bf16.mxu0 %vm829_vm4, %v6611_v4  ;;  %v6625_v17 = vcombine.low %v430_v13, %v440_v14  ;;  %5617 = vmatpush3.bf16.msra.mxu1 %v2243_v29  ;;  %v448_v18 = vor.u32 %v447_v9, %v444_v5  ;;  %v4836_v19 = vrot.slane %v6581_v43, 9  ;;  %v1882_v20 = vrot.slane %v6590_v49, 5 }
  0x24   : > { %v457_v22 = vrot.slane %v455_v15, 4  ;;  %v463_v23 = vrot.slane %v461_v16, 5  ;;  %v1885_v24 = vrot.slane %v338_v2, 5  ;;  %v466_v25 = vshrl.u32 %v6614_v11, 16  ;;  %6380 = vmatprep.subr.msk.bf16.mxu1 %vm878_vm0, %v6609_v3  ;;  %v6685_v16 = vld [vmem:[%s6560_s13 + $0x30] sm:$0xf] }
  0x25   : > { %5449 = vmatmul.mubr.msk.bf16.vlgmr.msra.gmra.mrb[0].mxu0 %vm829_vm4, %v6625_v17  ;;  %v449_v27 = vrot.slane %v448_v18, 4  ;;  %v1883_v29 = vsel %vm6537_vm3, %v4836_v19, %v1882_v20  ;;  %v1884_v32 = vrot.slane %v1882_v20, 4  ;;  %v469_v33 = vshll.u32 %v6614_v11, 16  ;;  %7984 = vst [vmem:[#allocation4_spill] sm:$0xff] %v6685_v16 }
  0x26   : > { %5481 = vmatpush3.bf16.msra.mxu0 %v6563_v28  ;;  %v458_v34 = vor.u32 %v457_v22, %v453_v10  ;;  %v468_v36 = vrot.slane %v466_v25, 4  ;;  %v475_v37 = vshll.u32 %v6630_v21, 16  ;;  %v479_v38 = vshrl.u32 %v6630_v21, 16 }
  0x27   : > { %v454_v39 = vsel %vm6585_vm7, %v449_v27, %v453_v10  ;;  %v1886_v40 = vsel %vm6537_vm3, %v1884_v32, %v1885_v24  ;;  %v471_v41 = vrot.slane %v469_v33, 5  ;;  %v485_v42 = vshll.u32 %v341_v35, 16  ;;  %6376 = vmatprep.subr.msk.bf16.mxu0 %vm878_vm0, %v6636_v26 }
  0x28   : > { %v459_v28 = vrot.slane %v458_v34, 4  ;;  %v6658_v45 = vcombine.low %v1883_v29, %v1886_v40  ;;  %v477_v46 = vrot.slane %v475_v37, 5  ;;  %v481_v47 = vrot.slane %v479_v38, 4 }
  0x29   : > { %v472_v50 = vor.u32 %v471_v41, %v468_v36  ;;  %v487_v51 = vrot.slane %v485_v42, 5  ;;  %v4837_v52 = vrot.slane %v6614_v11, 9  ;;  %v1889_v53 = vrot.slane %v6630_v21, 5 }
  0x2a   : > { %7983 = vst [vmem:[#allocation3_spill] sm:$0xff] %v6658_v45  ;;  %v464_v55 = vsel %vm6585_vm7, %v459_v28, %v463_v23  ;;  %5588 = vmatprep.mubr.msk.bf16.mxu1 %vm829_vm4, %v6658_v45  ;;  %v482_v56 = vor.u32 %v481_v47, %v477_v46  ;;  %v1892_v57 = vrot.slane %v341_v35, 5  ;;  %v490_v58 = vshrl.u32 %v6654_v44, 16  ;;  %v6692_v23 = vld [vmem:[%s6560_s13 + $0x34] sm:$0xf] }
  0x2b   : > { %v6670_v59 = vcombine.low %v454_v39, %v464_v55  ;;  %v473_v60 = vrot.slane %v472_v50, 4  ;;  %v1890_v61 = vsel %vm6537_vm3, %v4837_v52, %v1889_v53  ;;  %v1891_v63 = vrot.slane %v1889_v53, 4  ;;  %7986 = vst [vmem:[#allocation6_spill] sm:$0xff] %v6692_v23  ;;  %v347_v47 = vld [vmem:[%s6560_s13 + $0x38] sm:$0x1] }
  0x2c   : > { %v483_v0 = vrot.slane %v482_v56, 4  ;;  %v492_v2 = vrot.slane %v490_v58, 4  ;;  %v493_v5 = vshll.u32 %v6654_v44, 16  ;;  %v499_v9 = vshll.u32 %v6663_v54, 16  ;;  %v6715_v58 = vld [vmem:[%s6560_s13 + $0x3c] sm:$0xf] }
  0x2d   : > { %v478_v10 = vsel %vm6585_vm7, %v473_v60, %v477_v46  ;;  %v1893_v13 = vsel %vm6537_vm3, %v1891_v63, %v1892_v57  ;;  %5452 = vmatprep.mubr.msk.bf16.mxu0 %vm829_vm4, %v6670_v59  ;;  %v503_v14 = vshrl.u32 %v6663_v54, 16  ;;  %v509_v15 = vshll.u32 %v344_v1, 16 }
  0x2e   : > { %v488_v18 = vsel %vm6585_vm7, %v483_v0, %v487_v51  ;;  %v6689_v19 = vcombine.low %v1890_v61, %v1893_v13  ;;  %v495_v20 = vrot.slane %v493_v5, 5  ;;  %v501_v22 = vrot.slane %v499_v9, 5 }
  0x2f   : > { %v6694_v24 = vcombine.low %v478_v10, %v488_v18  ;;  %v505_v25 = vrot.slane %v503_v14, 4  ;;  %v511_v27 = vrot.slane %v509_v15, 5  ;;  %v4838_v29 = vrot.slane %v6654_v44, 9 }
  0x30   : > { %7985 = vst [vmem:[#allocation5_spill] sm:$0xff] %v6689_v19  ;;  %5589 = vmatmul.mubr.msk.bf16.gmra.mrb[4].mxu1 %vm829_vm4, %v6689_v19  ;;  %v496_v32 = vor.u32 %v495_v20, %v492_v2  ;;  %v1896_v33 = vrot.slane %v6663_v54, 5  ;;  %v1899_v34 = vrot.slane %v344_v1, 5  ;;  %v514_v35 = vshrl.u32 %v6685_v16, 16  ;;  %v6722_v1 = vld [vmem:[%s6560_s13 + $0x40] sm:$0xf] }
  0x31   : > { %5453 = vmatmul.mubr.msk.bf16.gmra.mrb[4].mxu0 %vm829_vm4, %v6694_v24  ;;  %v506_v36 = vor.u32 %v505_v25, %v501_v22  ;;  %v517_v37 = vshll.u32 %v6685_v16, 16  ;;  %v523_v38 = vshll.u32 %v6692_v23, 16  ;;  %v527_v39 = vshrl.u32 %v6692_v23, 16 }
  0x32   : > { %v497_v40 = vrot.slane %v496_v32, 4  ;;  %v1897_v41 = vsel %vm6537_vm3, %v4838_v29, %v1896_v33  ;;  %v1898_v42 = vrot.slane %v1896_v33, 4  ;;  %v516_v28 = vrot.slane %v514_v35, 4  ;;  %v350_v33 = vld [vmem:[%s6560_s13 + $0x44] sm:$0x1] }
  0x33   : > { %v507_v46 = vrot.slane %v506_v36, 4  ;;  %v519_v50 = vrot.slane %v517_v37, 5  ;;  %v525_v51 = vrot.slane %v523_v38, 5  ;;  %v529_v52 = vrot.slane %v527_v39, 4  ;;  %v6743_v36 = vld [vmem:[%s6560_s13 + $0x48] sm:$0xf] }
  0x34   : > { %v502_v53 = vsel %vm6585_vm7, %v497_v40, %v501_v22  ;;  %v1900_v55 = vsel %vm6537_vm3, %v1898_v42, %v1899_v34  ;;  %v533_v56 = vshll.u32 %v347_v47, 16  ;;  %v4839_v57 = vrot.slane %v6685_v16, 9 }
  0x35   : > { %v512_v60 = vsel %vm6585_vm7, %v507_v46, %v511_v27  ;;  %v6719_v61 = vcombine.low %v1897_v41, %v1900_v55  ;;  %v520_v63 = vor.u32 %v519_v50, %v516_v28  ;;  %v530_v0 = vor.u32 %v529_v52, %v525_v51  ;;  %v6750_v41 = vld [vmem:[%s6560_s13 + $0x4c] sm:$0xf] }
  0x36   : > { %v6724_v2 = vcombine.low %v502_v53, %v512_v60  ;;  %v535_v5 = vrot.slane %v533_v56, 5  ;;  %v1903_v9 = vrot.slane %v6692_v23, 5  ;;  %v1906_v10 = vrot.slane %v347_v47, 5 }
  0x37   : > { %7987 = vst [vmem:[#allocation7_spill] sm:$0xff] %v6719_v61  ;;  %5592 = vmatprep.mubr.msk.bf16.mxu1 %vm829_vm4, %v6719_v61  ;;  %v521_v13 = vrot.slane %v520_v63, 4  ;;  %v531_v14 = vrot.slane %v530_v0, 4  ;;  %v538_v15 = vshrl.u32 %v6715_v58, 16  ;;  %v541_v18 = vshll.u32 %v6715_v58, 16 }
  0x38   : > { %v1904_v20 = vsel %vm6537_vm3, %v4839_v57, %v1903_v9  ;;  %v1905_v22 = vrot.slane %v1903_v9, 4  ;;  %5456 = vmatprep.mubr.msk.bf16.mxu0 %vm829_vm4, %v6724_v2  ;;  %v547_v25 = vshll.u32 %v6722_v1, 16  ;;  %v551_v27 = vshrl.u32 %v6722_v1, 16  ;;  %v353_v9 = vld [vmem:[%s6560_s13 + $0x50] sm:$0x1] }
  0x39   : > { %v526_v29 = vsel %vm6585_vm7, %v521_v13, %v525_v51  ;;  %v536_v32 = vsel %vm6585_vm7, %v531_v14, %v535_v5  ;;  %v540_v34 = vrot.slane %v538_v15, 4  ;;  %v543_v35 = vrot.slane %v541_v18, 5 }
  0x3a   : > { %v6745_v37 = vcombine.low %v526_v29, %v536_v32  ;;  %v1907_v38 = vsel %vm6537_vm3, %v1905_v22, %v1906_v10  ;;  %v549_v39 = vrot.slane %v547_v25, 5  ;;  %v553_v40 = vrot.slane %v551_v27, 4  ;;  %v6778_v32 = vld [vmem:[%s6560_s13 + $0x58] sm:$0xf] }
  0x3b   : > { %v6752_v42 = vcombine.low %v1904_v20, %v1907_v38  ;;  %v544_v28 = vor.u32 %v543_v35, %v540_v34  ;;  %v557_v46 = vshll.u32 %v350_v33, 16  ;;  %v4840_v47 = vrot.slane %v6715_v58, 9  ;;  %v6770_v20 = vld [vmem:[%s6560_s13 + $0x54] sm:$0xf] }
  0x3c   : > { %7988 = vst [vmem:[#allocation8_spill] sm:$0xff] %v6745_v37  ;;  %5457 = vmatmul.mubr.msk.bf16.gmra.mrb[8].mxu0 %vm829_vm4, %v6745_v37  ;;  %v554_v50 = vor.u32 %v553_v40, %v549_v39  ;;  %v1910_v51 = vrot.slane %v6722_v1, 5  ;;  %v1913_v52 = vrot.slane %v350_v33, 5  ;;  %v562_v53 = vshrl.u32 %v6743_v36, 16 }
  0x3d   : > { %7989 = vst [vmem:[#allocation9_spill] sm:$0xff] %v6752_v42  ;;  %5593 = vmatmul.mubr.msk.bf16.gmra.mrb[8].mxu1 %vm829_vm4, %v6752_v42  ;;  %v545_v55 = vrot.slane %v544_v28, 4  ;;  %v559_v56 = vrot.slane %v557_v46, 5  ;;  %v565_v57 = vshll.u32 %v6743_v36, 16  ;;  %v571_v60 = vshll.u32 %v6750_v41, 16 }
  0x3e   : > { %v555_v63 = vrot.slane %v554_v50, 4  ;;  %v1911_v0 = vsel %vm6537_vm3, %v4840_v47, %v1910_v51  ;;  %v1912_v5 = vrot.slane %v1910_v51, 4  ;;  %v564_v10 = vrot.slane %v562_v53, 4  ;;  %v6895_v42 = vld [vmem:[%s6560_s13 + $0x88] sm:$0xf] }
  0x3f   : > { %v550_v13 = vsel %vm6585_vm7, %v545_v55, %v549_v39  ;;  %v567_v14 = vrot.slane %v565_v57, 5  ;;  %v573_v15 = vrot.slane %v571_v60, 5  ;;  %v575_v18 = vshrl.u32 %v6750_v41, 16 }
  0x40   : > { %v560_v22 = vsel %vm6585_vm7, %v555_v63, %v559_v56  ;;  %v1914_v25 = vsel %vm6537_vm3, %v1912_v5, %v1913_v52  ;;  %v581_v27 = vshll.u32 %v353_v9, 16  ;;  %v4841_v29 = vrot.slane %v6743_v36, 9 }
  0x41   : > { %v6780_v33 = vcombine.low %v550_v13, %v560_v22  ;;  %v6782_v34 = vcombine.low %v1911_v0, %v1914_v25  ;;  %v568_v35 = vor.u32 %v567_v14, %v564_v10  ;;  %v577_v38 = vrot.slane %v575_v18, 4  ;;  %v356_v0 = vld [vmem:[%s6560_s13 + $0x5c] sm:$0x1]  ;;  %v6802_v22 = vld [vmem:[%s6560_s13 + $0x60] sm:$0xf] }
  0x42   : > { %v583_v39 = vrot.slane %v581_v27, 5  ;;  %v1917_v40 = vrot.slane %v6750_v41, 5  ;;  %v1920_v28 = vrot.slane %v353_v9, 5  ;;  %v586_v46 = vshrl.u32 %v6770_v20, 16 }
  0x43   : > { %7990 = vst [vmem:[#allocation10_spill] sm:$0xff] %v6780_v33  ;;  %7991 = vst [vmem:[#allocation11_spill] sm:$0xff] %v6782_v34  ;;  %5596 = vmatprep.mubr.msk.bf16.mxu1 %vm829_vm4, %v6782_v34  ;;  %v569_v47 = vrot.slane %v568_v35, 4  ;;  %v578_v50 = vor.u32 %v577_v38, %v573_v15  ;;  %5460 = vmatprep.mubr.msk.bf16.mxu0 %vm829_vm4, %v6780_v33  ;;  %v589_v51 = vshll.u32 %v6770_v20, 16  ;;  %v595_v52 = vshll.u32 %v6778_v32, 16 }
  0x44   : > { %v1918_v53 = vsel %vm6537_vm3, %v4841_v29, %v1917_v40  ;;  %v1919_v55 = vrot.slane %v1917_v40, 4  ;;  %v588_v56 = vrot.slane %v586_v46, 4  ;;  %v599_v57 = vshrl.u32 %v6778_v32, 16  ;;  %v6810_v35 = vld [vmem:[%s6560_s13 + $0x64] sm:$0xf] }
  0x45   : > { %v574_v60 = vsel %vm6585_vm7, %v569_v47, %v573_v15  ;;  %v579_v63 = vrot.slane %v578_v50, 4  ;;  %v591_v5 = vrot.slane %v589_v51, 5  ;;  %v597_v9 = vrot.slane %v595_v52, 5  ;;  %v6860_v34 = vld [vmem:[%s6560_s13 + $0x78] sm:$0xf] }
  0x46   : > { %v1921_v10 = vsel %vm6537_vm3, %v1919_v55, %v1920_v28  ;;  %v601_v13 = vrot.slane %v599_v57, 4  ;;  %v605_v14 = vshll.u32 %v356_v0, 16  ;;  %v4842_v18 = vrot.slane %v6770_v20, 9 }
  0x47   : > { %v584_v25 = vsel %vm6585_vm7, %v579_v63, %v583_v39  ;;  %v6806_v27 = vcombine.low %v1918_v53, %v1921_v10  ;;  %v592_v15 = vor.u32 %v591_v5, %v588_v56  ;;  %v1924_v29 = vrot.slane %v6778_v32, 5  ;;  %v359_v53 = vld [vmem:[%s6560_s13 + $0x68] sm:$0x1]  ;;  %v6830_v10 = vld [vmem:[%s6560_s13 + $0x6c] sm:$0xf] }
  0x48   : > { %v6812_v38 = vcombine.low %v574_v60, %v584_v25  ;;  %v602_v40 = vor.u32 %v601_v13, %v597_v9  ;;  %v607_v28 = vrot.slane %v605_v14, 5  ;;  %v1927_v46 = vrot.slane %v356_v0, 5 }
  0x49   : > { %7992 = vst [vmem:[#allocation12_spill] sm:$0xff] %v6806_v27  ;;  %5597 = vmatmul.mubr.msk.bf16.gmra.mrb[12].mxu1 %vm829_vm4, %v6806_v27  ;;  %v593_v47 = vrot.slane %v592_v15, 4  ;;  %v1925_v39 = vsel %vm6537_vm3, %v4842_v18, %v1924_v29  ;;  %v1926_v50 = vrot.slane %v1924_v29, 4  ;;  %v610_v51 = vshrl.u32 %v6802_v22, 16  ;;  %v6837_v15 = vld [vmem:[%s6560_s13 + $0x70] sm:$0xf] }
  0x4a   : > { %7993 = vst [vmem:[#allocation13_spill] sm:$0xff] %v6812_v38  ;;  %5461 = vmatmul.mubr.msk.bf16.gmra.mrb[12].mxu0 %vm829_vm4, %v6812_v38  ;;  %v603_v52 = vrot.slane %v602_v40, 4  ;;  %v613_v55 = vshll.u32 %v6802_v22, 16  ;;  %v619_v56 = vshll.u32 %v6810_v35, 16  ;;  %v623_v57 = vshrl.u32 %v6810_v35, 16 }
  0x4b   : > { %v598_v60 = vsel %vm6585_vm7, %v593_v47, %v597_v9  ;;  %v1928_v63 = vsel %vm6537_vm3, %v1926_v50, %v1927_v46  ;;  %v612_v0 = vrot.slane %v610_v51, 4  ;;  %v629_v5 = vshll.u32 %v359_v53, 16 }
  0x4c   : > { %v608_v13 = vsel %vm6585_vm7, %v603_v52, %v607_v28  ;;  %v6834_v14 = vcombine.low %v1925_v39, %v1928_v63  ;;  %v615_v18 = vrot.slane %v613_v55, 5  ;;  %v621_v25 = vrot.slane %v619_v56, 5 }
  0x4d   : > { %v6839_v29 = vcombine.low %v598_v60, %v608_v13  ;;  %v625_v40 = vrot.slane %v623_v57, 4  ;;  %v631_v9 = vrot.slane %v629_v5, 5  ;;  %v4843_v47 = vrot.slane %v6802_v22, 9  ;;  %v362_v5 = vld [vmem:[%s6560_s13 + $0x74] sm:$0x1] }
  0x4e   : > { %7994 = vst [vmem:[#allocation14_spill] sm:$0xff] %v6834_v14  ;;  %5600 = vmatprep.mubr.msk.bf16.mxu1 %vm829_vm4, %v6834_v14  ;;  %v616_v46 = vor.u32 %v615_v18, %v612_v0  ;;  %v1931_v50 = vrot.slane %v6810_v35, 5  ;;  %v1934_v28 = vrot.slane %v359_v53, 5  ;;  %v634_v39 = vshrl.u32 %v6830_v10, 16 }
  0x4f   : > { %7995 = vst [vmem:[#allocation15_spill] sm:$0xff] %v6839_v29  ;;  %v626_v51 = vor.u32 %v625_v40, %v621_v25  ;;  %5464 = vmatprep.mubr.msk.bf16.mxu0 %vm829_vm4, %v6839_v29  ;;  %v637_v52 = vshll.u32 %v6830_v10, 16  ;;  %v643_v55 = vshll.u32 %v6837_v15, 16  ;;  %v647_v56 = vshrl.u32 %v6837_v15, 16  ;;  %v376_v29 = vld [vmem:[%s6560_s13 + $0xac] sm:$0xf] }
  0x50   : > { %v617_v57 = vrot.slane %v616_v46, 4  ;;  %v1932_v60 = vsel %vm6537_vm3, %v4843_v47, %v1931_v50  ;;  %v1933_v63 = vrot.slane %v1931_v50, 4  ;;  %v636_v53 = vrot.slane %v634_v39, 4 }
  0x51   : > { %v627_v0 = vrot.slane %v626_v51, 4  ;;  %v639_v13 = vrot.slane %v637_v52, 5  ;;  %v645_v18 = vrot.slane %v643_v55, 5  ;;  %v649_v40 = vrot.slane %v647_v56, 4  ;;  %v6867_v52 = vld [vmem:[%s6560_s13 + $0x7c] sm:$0xf] }
  0x52   : > { %v622_v12 = vsel %vm6585_vm7, %v617_v57, %v621_v25  ;;  %v1935_v14 = vsel %vm6537_vm3, %v1933_v63, %v1934_v28  ;;  %v653_v27 = vshll.u32 %v362_v5, 16  ;;  %v4844_v46 = vrot.slane %v6830_v10, 9 }
  0x53   : > { %v632_v47 = vsel %vm6585_vm7, %v627_v0, %v631_v9  ;;  %v6864_v50 = vcombine.low %v1932_v60, %v1935_v14  ;;  %v640_v39 = vor.u32 %v639_v13, %v636_v53  ;;  %v650_v51 = vor.u32 %v649_v40, %v645_v18  ;;  %v365_v13 = vld [vmem:[%s6560_s13 + $0x80] sm:$0x1] }
  0x54   : > { %v6869_v55 = vcombine.low %v622_v12, %v632_v47  ;;  %v655_v25 = vrot.slane %v653_v27, 5  ;;  %v1938_v28 = vrot.slane %v6837_v15, 5  ;;  %v1941_v56 = vrot.slane %v362_v5, 5 }
  0x55   : > { %7996 = vst [vmem:[#allocation16_spill] sm:$0xff] %v6864_v50  ;;  %5601 = vmatmul.mubr.msk.bf16.gmra.mrb[16].mxu1 %vm829_vm4, %v6864_v50  ;;  %v641_v57 = vrot.slane %v640_v39, 4  ;;  %v651_v63 = vrot.slane %v650_v51, 4  ;;  %v658_v14 = vshrl.u32 %v6860_v34, 16  ;;  %v661_v9 = vshll.u32 %v6860_v34, 16 }
  0x56   : > { %7997 = vst [vmem:[#allocation17_spill] sm:$0xff] %v6869_v55  ;;  %5465 = vmatmul.mubr.msk.bf16.gmra.mrb[16].mxu0 %vm829_vm4, %v6869_v55  ;;  %v1939_v12 = vsel %vm6537_vm3, %v4844_v46, %v1938_v28  ;;  %v1940_v27 = vrot.slane %v1938_v28, 4  ;;  %v667_v60 = vshll.u32 %v6867_v52, 16  ;;  %v671_v53 = vshrl.u32 %v6867_v52, 16  ;;  %v6888_v39 = vld [vmem:[%s6560_s13 + $0x84] sm:$0xf] }
  0x57   : > { %v646_v0 = vsel %vm6585_vm7, %v641_v57, %v645_v18  ;;  %v656_v5 = vsel %vm6585_vm7, %v651_v63, %v655_v25  ;;  %v660_v40 = vrot.slane %v658_v14, 4  ;;  %v663_v47 = vrot.slane %v661_v9, 5 }
  0x58   : > { %v6890_v51 = vcombine.low %v646_v0, %v656_v5  ;;  %v1942_v46 = vsel %vm6537_vm3, %v1940_v27, %v1941_v56  ;;  %v669_v28 = vrot.slane %v667_v60, 5  ;;  %v673_v50 = vrot.slane %v671_v53, 4 }
  0x59   : > { %v6897_v61 = vcombine.low %v1939_v12, %v1942_v46  ;;  %v664_v18 = vor.u32 %v663_v47, %v660_v40  ;;  %v677_v57 = vshll.u32 %v365_v13, 16  ;;  %v4845_v25 = vrot.slane %v6860_v34, 9 }
  0x5a   : > { %7998 = vst [vmem:[#allocation18_spill] sm:$0xff] %v6890_v51  ;;  %v674_v63 = vor.u32 %v673_v50, %v669_v28  ;;  %v1945_v14 = vrot.slane %v6867_v52, 5  ;;  %v1948_v9 = vrot.slane %v365_v13, 5  ;;  %5468 = vmatprep.mubr.msk.bf16.mxu0 %vm829_vm4, %v6890_v51  ;;  %v682_v56 = vshrl.u32 %v6888_v39, 16  ;;  %v368_v13 = vld [vmem:[%s6560_s13 + $0x8c] sm:$0x1] }
  0x5b   : > { %7999 = vst [vmem:[#allocation19_spill] sm:$0xff] %v6897_v61  ;;  %5604 = vmatprep.mubr.msk.bf16.mxu1 %vm829_vm4, %v6897_v61  ;;  %v665_v12 = vrot.slane %v664_v18, 4  ;;  %v679_v27 = vrot.slane %v677_v57, 5  ;;  %v685_v60 = vshll.u32 %v6888_v39, 16  ;;  %v691_v53 = vshll.u32 %v6895_v42, 16 }
  0x5c   : > { %v675_v50 = vrot.slane %v674_v63, 4  ;;  %v1946_v0 = vsel %vm6537_vm3, %v4845_v25, %v1945_v14  ;;  %v1947_v5 = vrot.slane %v1945_v14, 4  ;;  %v684_v40 = vrot.slane %v682_v56, 4  ;;  %v6915_v57 = vld [vmem:[%s6560_s13 + $0x90] sm:$0xf] }
  0x5d   : > { %v670_v47 = vsel %vm6585_vm7, %v665_v12, %v669_v28  ;;  %v687_v46 = vrot.slane %v685_v60, 5  ;;  %v693_v19 = vrot.slane %v691_v53, 5  ;;  %v695_v18 = vshrl.u32 %v6895_v42, 16  ;;  %v6923_v14 = vld [vmem:[%s6560_s13 + $0x94] sm:$0xf] }
  0x5e   : > { %v680_v61 = vsel %vm6585_vm7, %v675_v50, %v679_v27  ;;  %v1949_v63 = vsel %vm6537_vm3, %v1947_v5, %v1948_v9  ;;  %v701_v45 = vshll.u32 %v368_v13, 16  ;;  %v4846_v25 = vrot.slane %v6888_v39, 9 }
  0x5f   : > { %v6925_v56 = vcombine.low %v670_v47, %v680_v61  ;;  %v6927_v28 = vcombine.low %v1946_v0, %v1949_v63  ;;  %v688_v12 = vor.u32 %v687_v46, %v684_v40  ;;  %v697_v60 = vrot.slane %v695_v18, 4  ;;  %v371_v18 = vld [vmem:[%s6560_s13 + $0x98] sm:$0x1] }
  0x60   : > { %v703_v53 = vrot.slane %v701_v45, 5  ;;  %v1952_v62 = vrot.slane %v6895_v42, 5  ;;  %v1955_v51 = vrot.slane %v368_v13, 5  ;;  %v706_v27 = vshrl.u32 %v6915_v57, 16 }
  0x61   : > { %8000 = vst [vmem:[#allocation20_spill] sm:$0xff] %v6925_v56  ;;  %8001 = vst [vmem:[#allocation21_spill] sm:$0xff] %v6927_v28  ;;  %5605 = vmatmul.mubr.msk.bf16.gmra.mrb[20].mxu1 %vm829_vm4, %v6927_v28  ;;  %5469 = vmatmul.mubr.msk.bf16.gmra.mrb[20].mxu0 %vm829_vm4, %v6925_v56  ;;  %v689_v9 = vrot.slane %v688_v12, 4  ;;  %v698_v61 = vor.u32 %v697_v60, %v693_v19  ;;  %v709_v50 = vshll.u32 %v6915_v57, 16  ;;  %v715_v0 = vshll.u32 %v6923_v14, 16 }
  0x62   : > { %v1953_v45 = vsel %vm6537_vm3, %v4846_v25, %v1952_v62  ;;  %v1954_v5 = vrot.slane %v1952_v62, 4  ;;  %v708_v13 = vrot.slane %v706_v27, 4  ;;  %v719_v40 = vshrl.u32 %v6923_v14, 16  ;;  %v6947_v25 = vld [vmem:[%s6560_s13 + $0x9c] sm:$0xf] }
  0x63   : > { %v694_v47 = vsel %vm6585_vm7, %v689_v9, %v693_v19  ;;  %v699_v46 = vrot.slane %v698_v61, 4  ;;  %v711_v63 = vrot.slane %v709_v50, 5  ;;  %v717_v12 = vrot.slane %v715_v0, 5  ;;  %v6955_v61 = vld [vmem:[%s6560_s13 + $0xa0] sm:$0xf] }
  0x64   : > { %v1956_v60 = vsel %vm6537_vm3, %v1954_v5, %v1955_v51  ;;  %v721_v28 = vrot.slane %v719_v40, 4  ;;  %v725_v56 = vshll.u32 %v371_v18, 16  ;;  %v4847_v55 = vrot.slane %v6915_v57, 9 }
  0x65   : > { %v704_v62 = vsel %vm6585_vm7, %v699_v46, %v703_v53  ;;  %v6951_v27 = vcombine.low %v1953_v45, %v1956_v60  ;;  %v712_v19 = vor.u32 %v711_v63, %v708_v13  ;;  %v1959_v9 = vrot.slane %v6923_v14, 5 }
  0x66   : > { %v6957_v50 = vcombine.low %v694_v47, %v704_v62  ;;  %v722_v51 = vor.u32 %v721_v28, %v717_v12  ;;  %v727_v0 = vrot.slane %v725_v56, 5  ;;  %v1962_v5 = vrot.slane %v371_v18, 5  ;;  %v374_v47 = vld [vmem:[%s6560_s13 + $0xa4] sm:$0x1] }
  0x67   : > { %8002 = vst [vmem:[#allocation22_spill] sm:$0xff] %v6951_v27  ;;  %5608 = vmatprep.mubr.msk.bf16.mxu1 %vm829_vm4, %v6951_v27  ;;  %v713_v40 = vrot.slane %v712_v19, 4  ;;  %v1960_v53 = vsel %vm6537_vm3, %v4847_v55, %v1959_v9  ;;  %v1961_v45 = vrot.slane %v1959_v9, 4  ;;  %v730_v13 = vshrl.u32 %v6947_v25, 16  ;;  %v375_v19 = vld [vmem:[%s6560_s13 + $0xa8] sm:$0xf] }
  0x68   : > { %8003 = vst [vmem:[#allocation23_spill] sm:$0xff] %v6957_v50  ;;  %v723_v46 = vrot.slane %v722_v51, 4  ;;  %5472 = vmatprep.mubr.msk.bf16.mxu0 %vm829_vm4, %v6957_v50  ;;  %v733_v56 = vshll.u32 %v6947_v25, 16  ;;  %v739_v28 = vshll.u32 %v6955_v61, 16  ;;  %v743_v18 = vshrl.u32 %v6955_v61, 16 }
  0x69   : > { %v718_v63 = vsel %vm6585_vm7, %v713_v40, %v717_v12  ;;  %v1963_v55 = vsel %vm6537_vm3, %v1961_v45, %v1962_v5  ;;  %v732_v60 = vrot.slane %v730_v13, 4  ;;  %v749_v62 = vshll.u32 %v374_v47, 16 }
  0x6a   : > { %v728_v9 = vsel %vm6585_vm7, %v723_v46, %v727_v0  ;;  %v6977_v51 = vcombine.low %v1960_v53, %v1963_v55  ;;  %v735_v27 = vrot.slane %v733_v56, 5  ;;  %v741_v50 = vrot.slane %v739_v28, 5 }
  0x6b   : > { %v6980_v38 = vcombine.low %v718_v63, %v728_v9  ;;  %v745_v33 = vrot.slane %v743_v18, 4  ;;  %v751_v37 = vrot.slane %v749_v62, 5  ;;  %v4848_v12 = vrot.slane %v6947_v25, 9  ;;  %v377_v9 = vld [vmem:[%s6560_s13 + $0xb0] sm:$0x1] }
  0x6c   : > { %8004 = vst [vmem:[#allocation24_spill] sm:$0xff] %v6977_v51  ;;  %5609 = vmatmul.mubr.msk.bf16.gmra.mrb[24].mxu1 %vm829_vm4, %v6977_v51  ;;  %v736_v5 = vor.u32 %v735_v27, %v732_v60  ;;  %v1966_v40 = vrot.slane %v6955_v61, 5  ;;  %v1969_v45 = vrot.slane %v374_v47, 5  ;;  %v754_v0 = vshrl.u32 %v375_v19, 16 }
  0x6d   : > { %8005 = vst [vmem:[#allocation25_spill] sm:$0xff] %v6980_v38  ;;  %5473 = vmatmul.mubr.msk.bf16.gmra.mrb[24].mxu0 %vm829_vm4, %v6980_v38  ;;  %v746_v53 = vor.u32 %v745_v33, %v741_v50  ;;  %v757_v13 = vshll.u32 %v375_v19, 16  ;;  %v763_v46 = vshll.u32 %v376_v29, 16  ;;  %v767_v56 = vshrl.u32 %v376_v29, 16 }
  0x6e   : > { %v737_v28 = vrot.slane %v736_v5, 4  ;;  %v1967_v18 = vsel %vm6537_vm3, %v4848_v12, %v1966_v40  ;;  %v1968_v63 = vrot.slane %v1966_v40, 4  ;;  %v756_v55 = vrot.slane %v754_v0, 4 }
  0x6f   : > { %v747_v62 = vrot.slane %v746_v53, 4  ;;  %v759_v27 = vrot.slane %v757_v13, 5  ;;  %v765_v60 = vrot.slane %v763_v46, 5  ;;  %v769_v51 = vrot.slane %v767_v56, 4 }
  0x70   : > { %v742_v47 = vsel %vm6585_vm7, %v737_v28, %v741_v50  ;;  %v1970_v33 = vsel %vm6537_vm3, %v1968_v63, %v1969_v45  ;;  %v773_v38 = vshll.u32 %v377_v9, 16  ;;  %v4849_v16 = vrot.slane %v375_v19, 9 }
  0x71   : > { %v752_v5 = vsel %vm6585_vm7, %v747_v62, %v751_v37  ;;  %v6997_v23 = vcombine.low %v1967_v18, %v1970_v33  ;;  %v760_v12 = vor.u32 %v759_v27, %v756_v55  ;;  %v770_v40 = vor.u32 %v769_v51, %v765_v60 }
  0x72   : > { %v6999_v0 = vcombine.low %v742_v47, %v752_v5  ;;  %v775_v53 = vrot.slane %v773_v38, 5  ;;  %v1973_v13 = vrot.slane %v376_v29, 5  ;;  %v1976_v46 = vrot.slane %v377_v9, 5 }
  0x73   : > { %5612 = vmatprep.mubr.msk.bf16.mxu1 %vm829_vm4, %v6997_v23  ;;  %v761_v50 = vrot.slane %v760_v12, 4  ;;  %v771_v56 = vrot.slane %v770_v40, 4  ;;  %v7013_v51 = vcombine.low %v6715_v58, %v6722_v1  ;;  %v7025_v55 = vcombine.low %v6770_v20, %v6778_v32  ;;  %v4968_v40 = vld [vmem:[%s7929_s3 + $0x12] sm:$0x3] }
  0x74   : > { %v1974_v45 = vsel %vm6537_vm3, %v4849_v16, %v1973_v13  ;;  %v1975_v28 = vrot.slane %v1973_v13, 4  ;;  %5476 = vmatprep.mubr.msk.bf16.mxu0 %vm829_vm4, %v6999_v0  ;;  %v7021_v16 = vcombine.low %v6743_v36, %v6750_v41  ;;  %v7031_v9 = vcombine.low %v6802_v22, %v6810_v35 }
  0x75   : > { %v766_v37 = vsel %vm6585_vm7, %v761_v50, %v765_v60  ;;  %v776_v38 = vsel %vm6585_vm7, %v771_v56, %v775_v53  ;;  %v7035_v58 = vcombine.low %v6830_v10, %v6837_v15  ;;  %v7039_v1 = vcombine.low %v6860_v34, %v6867_v52  ;;  %v8015_v15 = vld [vmem:[#allocation20_spill] sm:$0xff]  ;;  %v8017_v52 = vld [vmem:[#allocation25_spill] sm:$0xff] }
  0x76   : > { %v7015_v18 = vcombine.low %v766_v37, %v776_v38  ;;  %v1977_v63 = vsel %vm6537_vm3, %v1975_v28, %v1976_v46  ;;  %v7045_v36 = vcombine.low %v6888_v39, %v6895_v42  ;;  %v7049_v41 = vcombine.low %v6915_v57, %v6923_v14  ;;  %v7152_v39 = vld [vmem:[%s6560_s13 + $0xb4] sm:$0xf]  ;;  %v7155_v57 = vld [vmem:[%s6560_s13 + $0xb8] sm:$0xf]  ;;  %v380_v14 = vld [vmem:[%s6560_s13 + $0xbc] sm:$0x1] }
  0x77   : > { %v7027_v62 = vcombine.low %v1974_v45, %v1977_v63  ;;  %v7053_v20 = vcombine.low %v6947_v25, %v6955_v61  ;;  %v7055_v32 = vcombine.low %v375_v19, %v376_v29  ;;  %v8006_v34 = vcombine.low %v6541_v7, %v6543_v8  ;;  %v4814_v7 = vld [vmem:[%s7929_s3 + $0x6] sm:$0x3]  ;;  %v4917_v8 = vld [vmem:[%s7929_s3 + $0xe] sm:$0x3]  ;;  %v5070_v53 = vld [vmem:[%s7929_s3 + $0x1a] sm:$0x3] }
  0x78   : > { %5477 = vmatmul.mubr.msk.bf16.gmra.mrb[28].mxu0 %vm829_vm4, %v7015_v18  ;;  %v7067_v42 = vcombine.low %v6567_v30, %v6570_v31  ;;  %v1348_v22 = vsel %vm878_vm0, %v6636_v26, 0  ;;  %v2411_v35 = vsel %vm878_vm0, %v6609_v3, 0  ;;  %v7075_v10 = vcombine.low %v6581_v43, %v6590_v49  ;;  %v8007_v43 = vld [vmem:[#allocation6_spill] sm:$0xff]  ;;  %v8008_v49 = vld [vmem:[#allocation4_spill] sm:$0xff]  ;;  %v8012_v26 = vld [vmem:[#allocation15_spill] sm:$0xff] }
  0x79   : > { %5613 = vmatmul.mubr.msk.bf16.gmra.mrb[28].mxu1 %vm829_vm4, %v7027_v62  ;;  %5482 = vmatprep.mubr.msk.bf16.mxu0 %vm829_vm4, %v8006_v34  ;;  %v7094_v30 = vcombine.low %v6614_v11, %v6630_v21  ;;  %v7099_v31 = vcombine.low %v6654_v44, %v6663_v54  ;;  %v7111_v3 = vcombine.low %v8008_v49, %v8007_v43  ;;  %v8010_v11 = vld [vmem:[#allocation10_spill] sm:$0xff]  ;;  %v8011_v21 = vld [vmem:[#allocation13_spill] sm:$0xff]  ;;  %v8016_v29 = vld [vmem:[#allocation23_spill] sm:$0xff]  ;;  %v4916_v25 = vrot.slane %v7152_v39, 9 }
  0x7a   : > { %5618 = vmatprep.mubr.msk.bf16.mxu1 %vm829_vm4, %v6611_v4  ;;  %v8009_v4 = vld [vmem:[#allocation8_spill] sm:$0xff]  ;;  %v8013_v44 = vld [vmem:[#allocation17_spill] sm:$0xff]  ;;  %v8014_v54 = vld [vmem:[#allocation18_spill] sm:$0xff]  ;;  %v2609_v61 = vrot.slane %v7155_v57, 5  ;;  %v2612_v19 = vrot.slane %v380_v14, 5  ;;  %v1578_v5 = vsel %vm878_vm0, %v4814_v7, 0 }
  0x7b   : > { %v2625_v12 = vsel %vm878_vm0, %v4917_v8, 0  ;;  %v1544_v13 = vshrl.u32 %v7152_v39, 16  ;;  %v1547_v46 = vshll.u32 %v7152_v39, 16  ;;  %v1553_v50 = vshll.u32 %v7155_v57, 16 }
  0x7c   : > { %v2610_v27 = vsel %vm6537_vm3, %v4916_v25, %v2609_v61  ;;  %v2611_v60 = vrot.slane %v2609_v61, 4  ;;  %v1557_v56 = vshrl.u32 %v7155_v57, 16  ;;  %v8018_v61 = vld [vmem:[#allocation2_spill] sm:$0xff] }
  0x7d   : > { %v1546_v45 = vrot.slane %v1544_v13, 4  ;;  %v1549_v28 = vrot.slane %v1547_v46, 5  ;;  %v1555_v37 = vrot.slane %v1553_v50, 5  ;;  %v8025_v13 = vld [vmem:[#allocation14_spill] sm:$0xff]  ;;  %v8026_v46 = vld [vmem:[#allocation16_spill] sm:$0xff]  ;;  %v8027_v50 = vld [vmem:[#allocation19_spill] sm:$0xff] }
  0x7e   : > { %v2613_v47 = vsel %vm6537_vm3, %v2611_v60, %v2612_v19  ;;  %v1559_v38 = vrot.slane %v1557_v56, 4  ;;  %v2894_v19 = vsel %vm878_vm0, %v4968_v40, 0  ;;  %v5069_v60 = vld [vmem:[%s7929_s3 + $0x18] sm:$0x3] }
  0x7f   : > { %v7166_v33 = vcombine.low %v2610_v27, %v2613_v47  ;;  %v1550_v63 = vor.u32 %v1549_v28, %v1546_v45  ;;  %v3733_v27 = vsel %vm878_vm0, %v5070_v53, 0  ;;  %v8020_v47 = vld [vmem:[#allocation5_spill] sm:$0xff]  ;;  %v8029_v45 = vld [vmem:[#allocation22_spill] sm:$0xff]  ;;  %v8030_v28 = vld [vmem:[#allocation24_spill] sm:$0xff] }
  0x80   : > { %5483 = vmatmul.mubr.msk.bf16.vlgmr.msra.gmra.mrb[0].mxu0 %vm829_vm4, %v7067_v42  ;;  %v1560_v34 = vor.u32 %v1559_v38, %v1555_v37  ;;  %v8028_v56 = vld [vmem:[#allocation21_spill] sm:$0xff]  ;;  %v3897_v38 = vsel %vm878_vm0, %v5069_v60, 0 }
  0x81   : > { %5619 = vmatmul.mubr.msk.bf16.vlgmr.msra.gmra.mrb[0].mxu1 %vm829_vm4, %v6625_v17  ;;  %5515 = vmatpush3.bf16.msra.mxu0 %v1348_v22  ;;  %v1563_v22 = vshll.u32 %v380_v14, 16  ;;  %v7252_v14 = vcombine.low %v7152_v39, %v7155_v57  ;;  %v4967_v39 = vld [vmem:[%s7929_s3 + $0x10] sm:$0x3]  ;;  %v8019_v57 = vld [vmem:[#allocation3_spill] sm:$0xff] }
  0x82   : > { %5651 = vmatpush3.bf16.msra.mxu1 %v2411_v35  ;;  %5622 = vmatprep.mubr.msk.bf16.mxu1 %vm829_vm4, %v6670_v59  ;;  %v1551_v35 = vrot.slane %v1550_v63, 4  ;;  %v5001_v63 = vld [vmem:[%s7929_s3 + $0x14] sm:$0x3] }
  0x83   : > { %5486 = vmatprep.mubr.msk.bf16.mxu0 %vm829_vm4, %v7075_v10  ;;  %6377 = vmatprep.subr.msk.bf16.mxu0 %vm878_vm0, %v4814_v7  ;;  %v1561_v7 = vrot.slane %v1560_v34, 4  ;;  %v5103_v34 = vld [vmem:[%s7929_s3 + $0x1c] sm:$0x3] }
  0x84   : > { %6381 = vmatprep.subr.msk.bf16.mxu1 %vm878_vm0, %v4917_v8  ;;  %v1565_v8 = vrot.slane %v1563_v22, 5  ;;  %v1556_v43 = vsel %vm6585_vm7, %v1551_v35, %v1555_v37  ;;  %v3058_v37 = vsel %vm878_vm0, %v4967_v39, 0  ;;  %v3234_v22 = vsel %vm878_vm0, %v5001_v63, 0 }
  0x85   : > { %v4065_v35 = vsel %vm878_vm0, %v5103_v34, 0 }
  0x86   : > { %v1566_v49 = vsel %vm6585_vm7, %v1561_v7, %v1565_v8  ;;  %v5019_v7 = vld [vmem:[%s7929_s3 + $0x16] sm:$0x3] }
  0x87   : > { %v7254_v25 = vcombine.low %v1556_v43, %v1566_v49 }
  0x88   : > { %5487 = vmatmul.mubr.msk.bf16.gmra.mrb[4].mxu0 %vm829_vm4, %v7094_v30 }
  0x89   : > { %5623 = vmatmul.mubr.msk.bf16.gmra.mrb[4].mxu1 %vm829_vm4, %v6694_v24  ;;  %5490 = vmatprep.mubr.msk.bf16.mxu0 %vm829_vm4, %v7099_v31 }
  0x8a   : > { %5626 = vmatprep.mubr.msk.bf16.mxu1 %vm829_vm4, %v6724_v2 }
  0x90   : > { %5491 = vmatmul.mubr.msk.bf16.gmra.mrb[8].mxu0 %vm829_vm4, %v7111_v3 }
  0x91   : > { %5627 = vmatmul.mubr.msk.bf16.gmra.mrb[8].mxu1 %vm829_vm4, %v8009_v4  ;;  %5494 = vmatprep.mubr.msk.bf16.mxu0 %vm829_vm4, %v7013_v51 }
  0x92   : > { %5630 = vmatprep.mubr.msk.bf16.mxu1 %vm829_vm4, %v8010_v11 }
  0x98   : > { %5495 = vmatmul.mubr.msk.bf16.gmra.mrb[12].mxu0 %vm829_vm4, %v7021_v16 }
  0x99   : > { %5631 = vmatmul.mubr.msk.bf16.gmra.mrb[12].mxu1 %vm829_vm4, %v8011_v21  ;;  %5498 = vmatprep.mubr.msk.bf16.mxu0 %vm829_vm4, %v7025_v55 }
  0x9a   : > { %5634 = vmatprep.mubr.msk.bf16.mxu1 %vm829_vm4, %v8012_v26 }
  0xa0   : > { %5499 = vmatmul.mubr.msk.bf16.gmra.mrb[16].mxu0 %vm829_vm4, %v7031_v9 }
  0xa1   : > { %5635 = vmatmul.mubr.msk.bf16.gmra.mrb[16].mxu1 %vm829_vm4, %v8013_v44  ;;  %5502 = vmatprep.mubr.msk.bf16.mxu0 %vm829_vm4, %v7035_v58 }
  0xa2   : > { %5638 = vmatprep.mubr.msk.bf16.mxu1 %vm829_vm4, %v8014_v54 }
  0xa8   : > { %5503 = vmatmul.mubr.msk.bf16.gmra.mrb[20].mxu0 %vm829_vm4, %v7039_v1 }
  0xa9   : > { %5639 = vmatmul.mubr.msk.bf16.gmra.mrb[20].mxu1 %vm829_vm4, %v8015_v15  ;;  %5506 = vmatprep.mubr.msk.bf16.mxu0 %vm829_vm4, %v7045_v36 }
  0xaa   : > { %5642 = vmatprep.mubr.msk.bf16.mxu1 %vm829_vm4, %v8016_v29 }
  0xb0   : > { %5507 = vmatmul.mubr.msk.bf16.gmra.mrb[24].mxu0 %vm829_vm4, %v7049_v41 }
  0xb1   : > { %5643 = vmatmul.mubr.msk.bf16.gmra.mrb[24].mxu1 %vm829_vm4, %v8017_v52  ;;  %5510 = vmatprep.mubr.msk.bf16.mxu0 %vm829_vm4, %v7053_v20 }
  0xb2   : > { %5646 = vmatprep.mubr.msk.bf16.mxu1 %vm829_vm4, %v6999_v0 }
  0xb8   : > { %5511 = vmatmul.mubr.msk.bf16.gmra.mrb[28].mxu0 %vm829_vm4, %v7055_v32 }
  0xb9   : > { %5647 = vmatmul.mubr.msk.bf16.gmra.mrb[28].mxu1 %vm829_vm4, %v7015_v18  ;;  %5516 = vmatprep.mubr.msk.bf16.mxu0 %vm829_vm4, %v7067_v42 }
  0xba   : > { %5652 = vmatprep.mubr.msk.bf16.mxu1 %vm829_vm4, %v6625_v17 }
  0xc0   : > { %5517 = vmatmul.mubr.msk.bf16.vlgmr.msra.gmra.mrb[0].mxu0 %vm829_vm4, %v7075_v10 }
  0xc1   : > { %5653 = vmatmul.mubr.msk.bf16.vlgmr.msra.gmra.mrb[0].mxu1 %vm829_vm4, %v6670_v59  ;;  %5549 = vmatpush3.bf16.msra.mxu0 %v1578_v5  ;;  %v8021_v5 = vld [vmem:[#allocation7_spill] sm:$0xff] }
  0xc2   : > { %5685 = vmatpush3.bf16.msra.mxu1 %v2625_v12  ;;  %5656 = vmatprep.mubr.msk.bf16.mxu1 %vm829_vm4, %v6694_v24  ;;  %v8022_v12 = vld [vmem:[#allocation9_spill] sm:$0xff] }
  0xc3   : > { %5520 = vmatprep.mubr.msk.bf16.mxu0 %vm829_vm4, %v7094_v30  ;;  %6382 = vmatprep.subr.msk.bf16.mxu0 %vm878_vm0, %v4968_v40  ;;  %v8023_v40 = vld [vmem:[#allocation11_spill] sm:$0xff] }
  0xc4   : > { %6386 = vmatprep.subr.msk.bf16.mxu1 %vm878_vm0, %v5070_v53  ;;  %v8024_v53 = vld [vmem:[#allocation12_spill] sm:$0xff] }
  0xc8   : > { %5521 = vmatmul.mubr.msk.bf16.gmra.mrb[4].mxu0 %vm829_vm4, %v7099_v31 }
  0xc9   : > { %5657 = vmatmul.mubr.msk.bf16.gmra.mrb[4].mxu1 %vm829_vm4, %v6724_v2  ;;  %5524 = vmatprep.mubr.msk.bf16.mxu0 %vm829_vm4, %v7111_v3 }
  0xca   : > { %5660 = vmatprep.mubr.msk.bf16.mxu1 %vm829_vm4, %v8009_v4 }
  0xd0   : > { %5525 = vmatmul.mubr.msk.bf16.gmra.mrb[8].mxu0 %vm829_vm4, %v7013_v51 }
  0xd1   : > { %5661 = vmatmul.mubr.msk.bf16.gmra.mrb[8].mxu1 %vm829_vm4, %v8010_v11  ;;  %5528 = vmatprep.mubr.msk.bf16.mxu0 %vm829_vm4, %v7021_v16 }
  0xd2   : > { %5664 = vmatprep.mubr.msk.bf16.mxu1 %vm829_vm4, %v8011_v21 }
  0xd8   : > { %5529 = vmatmul.mubr.msk.bf16.gmra.mrb[12].mxu0 %vm829_vm4, %v7025_v55 }
  0xd9   : > { %5665 = vmatmul.mubr.msk.bf16.gmra.mrb[12].mxu1 %vm829_vm4, %v8012_v26  ;;  %5532 = vmatprep.mubr.msk.bf16.mxu0 %vm829_vm4, %v7031_v9 }
  0xda   : > { %5668 = vmatprep.mubr.msk.bf16.mxu1 %vm829_vm4, %v8013_v44 }
  0xe0   : > { %5533 = vmatmul.mubr.msk.bf16.gmra.mrb[16].mxu0 %vm829_vm4, %v7035_v58 }
  0xe1   : > { %5669 = vmatmul.mubr.msk.bf16.gmra.mrb[16].mxu1 %vm829_vm4, %v8014_v54  ;;  %5536 = vmatprep.mubr.msk.bf16.mxu0 %vm829_vm4, %v7039_v1 }
  0xe2   : > { %5672 = vmatprep.mubr.msk.bf16.mxu1 %vm829_vm4, %v8015_v15 }
  0xe8   : > { %5537 = vmatmul.mubr.msk.bf16.gmra.mrb[20].mxu0 %vm829_vm4, %v7045_v36 }
  0xe9   : > { %5673 = vmatmul.mubr.msk.bf16.gmra.mrb[20].mxu1 %vm829_vm4, %v8016_v29  ;;  %5540 = vmatprep.mubr.msk.bf16.mxu0 %vm829_vm4, %v7049_v41 }
  0xea   : > { %5676 = vmatprep.mubr.msk.bf16.mxu1 %vm829_vm4, %v8017_v52 }
  0xf0   : > { %5541 = vmatmul.mubr.msk.bf16.gmra.mrb[24].mxu0 %vm829_vm4, %v7053_v20 }
  0xf1   : > { %5677 = vmatmul.mubr.msk.bf16.gmra.mrb[24].mxu1 %vm829_vm4, %v6999_v0  ;;  %5544 = vmatprep.mubr.msk.bf16.mxu0 %vm829_vm4, %v7055_v32 }
  0xf2   : > { %5680 = vmatprep.mubr.msk.bf16.mxu1 %vm829_vm4, %v7015_v18 }
  0xf8   : > { %5545 = vmatmul.mubr.msk.bf16.gmra.mrb[28].mxu0 %vm829_vm4, %v7252_v14 }
  0xf9   : > { %5681 = vmatmul.mubr.msk.bf16.gmra.mrb[28].mxu1 %vm829_vm4, %v7254_v25  ;;  %5550 = vmatprep.mubr.msk.bf16.mxu0 %vm829_vm4, %v6625_v17 }
  0xfa   : > { %5686 = vmatprep.mubr.msk.bf16.mxu1 %vm829_vm4, %v8018_v61 }
 0x100   : > { %5551 = vmatmul.mubr.msk.bf16.vlgmr.msra.gmra.mrb[0].mxu0 %vm829_vm4, %v6670_v59 }
 0x101   : > { %5687 = vmatmul.mubr.msk.bf16.vlgmr.msra.gmra.mrb[0].mxu1 %vm829_vm4, %v8019_v57  ;;  %5719 = vmatpush3.bf16.msra.mxu0 %v2894_v19 }
 0x102   : > { %5855 = vmatpush3.bf16.msra.mxu1 %v3733_v27  ;;  %5690 = vmatprep.mubr.msk.bf16.mxu1 %vm829_vm4, %v8020_v47 }
 0x103   : > { %5554 = vmatprep.mubr.msk.bf16.mxu0 %vm829_vm4, %v6694_v24  ;;  %6383 = vmatprep.subr.msk.bf16.mxu0 %vm878_vm0, %v4967_v39 }
 0x104   : > { %6387 = vmatprep.subr.msk.bf16.mxu1 %vm878_vm0, %v5069_v60 }
 0x108   : > { %5555 = vmatmul.mubr.msk.bf16.gmra.mrb[4].mxu0 %vm829_vm4, %v6724_v2 }
 0x109   : > { %5691 = vmatmul.mubr.msk.bf16.gmra.mrb[4].mxu1 %vm829_vm4, %v8021_v5  ;;  %5558 = vmatprep.mubr.msk.bf16.mxu0 %vm829_vm4, %v8009_v4 }
 0x10a   : > { %5694 = vmatprep.mubr.msk.bf16.mxu1 %vm829_vm4, %v8022_v12 }
 0x110   : > { %5559 = vmatmul.mubr.msk.bf16.gmra.mrb[8].mxu0 %vm829_vm4, %v8010_v11 }
 0x111   : > { %5695 = vmatmul.mubr.msk.bf16.gmra.mrb[8].mxu1 %vm829_vm4, %v8023_v40  ;;  %5562 = vmatprep.mubr.msk.bf16.mxu0 %vm829_vm4, %v8011_v21 }
 0x112   : > { %5698 = vmatprep.mubr.msk.bf16.mxu1 %vm829_vm4, %v8024_v53 }
 0x118   : > { %5563 = vmatmul.mubr.msk.bf16.gmra.mrb[12].mxu0 %vm829_vm4, %v8012_v26 }
 0x119   : > { %5699 = vmatmul.mubr.msk.bf16.gmra.mrb[12].mxu1 %vm829_vm4, %v8025_v13  ;;  %5566 = vmatprep.mubr.msk.bf16.mxu0 %vm829_vm4, %v8013_v44 }
 0x11a   : > { %5702 = vmatprep.mubr.msk.bf16.mxu1 %vm829_vm4, %v8026_v46 }
 0x120   : > { %5567 = vmatmul.mubr.msk.bf16.gmra.mrb[16].mxu0 %vm829_vm4, %v8014_v54 }
 0x121   : > { %5703 = vmatmul.mubr.msk.bf16.gmra.mrb[16].mxu1 %vm829_vm4, %v8027_v50  ;;  %5570 = vmatprep.mubr.msk.bf16.mxu0 %vm829_vm4, %v8015_v15 }
 0x122   : > { %5706 = vmatprep.mubr.msk.bf16.mxu1 %vm829_vm4, %v8028_v56 }
 0x128   : > { %5571 = vmatmul.mubr.msk.bf16.gmra.mrb[20].mxu0 %vm829_vm4, %v8016_v29 }
 0x129   : > { %5707 = vmatmul.mubr.msk.bf16.gmra.mrb[20].mxu1 %vm829_vm4, %v8029_v45  ;;  %5574 = vmatprep.mubr.msk.bf16.mxu0 %vm829_vm4, %v8017_v52 }
 0x12a   : > { %5710 = vmatprep.mubr.msk.bf16.mxu1 %vm829_vm4, %v8030_v28 }
 0x130   : > { %5575 = vmatmul.mubr.msk.bf16.gmra.mrb[24].mxu0 %vm829_vm4, %v6999_v0 }
 0x131   : > { %5711 = vmatmul.mubr.msk.bf16.gmra.mrb[24].mxu1 %vm829_vm4, %v6997_v23  ;;  %5578 = vmatprep.mubr.msk.bf16.mxu0 %vm829_vm4, %v7015_v18 }
 0x132   : > { %5714 = vmatprep.mubr.msk.bf16.mxu1 %vm829_vm4, %v7027_v62 }
 0x138   : > { %5579 = vmatmul.mubr.msk.bf16.gmra.mrb[28].mxu0 %vm829_vm4, %v7254_v25 }
 0x139   : > { %5715 = vmatmul.mubr.msk.bf16.gmra.mrb[28].mxu1 %vm829_vm4, %v7166_v33  ;;  %5720 = vmatprep.mubr.msk.bf16.mxu0 %vm829_vm4, %v6625_v17 }
 0x13a   : > { %5856 = vmatprep.mubr.msk.bf16.mxu1 %vm829_vm4, %v8018_v61 }
 0x140   : > { %5721 = vmatmul.mubr.msk.bf16.vlgmr.msra.gmra.mrb[32].mxu0 %vm829_vm4, %v6670_v59 }
 0x141   : > { %5857 = vmatmul.mubr.msk.bf16.vlgmr.msra.gmra.mrb[32].mxu1 %vm829_vm4, %v8019_v57  ;;  %5753 = vmatpush3.bf16.msra.mxu0 %v3058_v37 }
 0x142   : > { %5889 = vmatpush3.bf16.msra.mxu1 %v3897_v38  ;;  %5860 = vmatprep.mubr.msk.bf16.mxu1 %vm829_vm4, %v8020_v47 }
 0x143   : > { %5724 = vmatprep.mubr.msk.bf16.mxu0 %vm829_vm4, %v6694_v24  ;;  %6384 = vmatprep.subr.msk.bf16.mxu0 %vm878_vm0, %v5001_v63 }
 0x144   : > { %6388 = vmatprep.subr.msk.bf16.mxu1 %vm878_vm0, %v5103_v34 }
 0x148   : > { %5725 = vmatmul.mubr.msk.bf16.gmra.mrb[36].mxu0 %vm829_vm4, %v6724_v2 }
 0x149   : > { %5861 = vmatmul.mubr.msk.bf16.gmra.mrb[36].mxu1 %vm829_vm4, %v8021_v5  ;;  %5728 = vmatprep.mubr.msk.bf16.mxu0 %vm829_vm4, %v8009_v4 }
 0x14a   : > { %5864 = vmatprep.mubr.msk.bf16.mxu1 %vm829_vm4, %v8022_v12 }
 0x150   : > { %5729 = vmatmul.mubr.msk.bf16.gmra.mrb[40].mxu0 %vm829_vm4, %v8010_v11 }
 0x151   : > { %5865 = vmatmul.mubr.msk.bf16.gmra.mrb[40].mxu1 %vm829_vm4, %v8023_v40  ;;  %5732 = vmatprep.mubr.msk.bf16.mxu0 %vm829_vm4, %v8011_v21 }
 0x152   : > { %5868 = vmatprep.mubr.msk.bf16.mxu1 %vm829_vm4, %v8024_v53 }
 0x158   : > { %5733 = vmatmul.mubr.msk.bf16.gmra.mrb[44].mxu0 %vm829_vm4, %v8012_v26 }
 0x159   : > { %5869 = vmatmul.mubr.msk.bf16.gmra.mrb[44].mxu1 %vm829_vm4, %v8025_v13  ;;  %5736 = vmatprep.mubr.msk.bf16.mxu0 %vm829_vm4, %v8013_v44 }
 0x15a   : > { %5872 = vmatprep.mubr.msk.bf16.mxu1 %vm829_vm4, %v8026_v46 }
 0x160   : > { %5737 = vmatmul.mubr.msk.bf16.gmra.mrb[48].mxu0 %vm829_vm4, %v8014_v54 }
 0x161   : > { %5873 = vmatmul.mubr.msk.bf16.gmra.mrb[48].mxu1 %vm829_vm4, %v8027_v50  ;;  %5740 = vmatprep.mubr.msk.bf16.mxu0 %vm829_vm4, %v8015_v15 }
 0x162   : > { %5876 = vmatprep.mubr.msk.bf16.mxu1 %vm829_vm4, %v8028_v56 }
 0x168   : > { %5741 = vmatmul.mubr.msk.bf16.gmra.mrb[52].mxu0 %vm829_vm4, %v8016_v29 }
 0x169   : > { %5877 = vmatmul.mubr.msk.bf16.gmra.mrb[52].mxu1 %vm829_vm4, %v8029_v45  ;;  %5744 = vmatprep.mubr.msk.bf16.mxu0 %vm829_vm4, %v8017_v52 }
 0x16a   : > { %5880 = vmatprep.mubr.msk.bf16.mxu1 %vm829_vm4, %v8030_v28 }
 0x170   : > { %5745 = vmatmul.mubr.msk.bf16.gmra.mrb[56].mxu0 %vm829_vm4, %v6999_v0 }
 0x171   : > { %5881 = vmatmul.mubr.msk.bf16.gmra.mrb[56].mxu1 %vm829_vm4, %v6997_v23  ;;  %5748 = vmatprep.mubr.msk.bf16.mxu0 %vm829_vm4, %v7015_v18 }
 0x172   : > { %5884 = vmatprep.mubr.msk.bf16.mxu1 %vm829_vm4, %v7027_v62 }
 0x178   : > { %5749 = vmatmul.mubr.msk.bf16.gmra.mrb[60].mxu0 %vm829_vm4, %v7254_v25 }
 0x179   : > { %5885 = vmatmul.mubr.msk.bf16.gmra.mrb[60].mxu1 %vm829_vm4, %v7166_v33  ;;  %5754 = vmatprep.mubr.msk.bf16.mxu0 %vm829_vm4, %v7067_v42  ;;  %v5121_v42 = vld [vmem:[%s7929_s3 + $0x1e] sm:$0x3] }
 0x17a   : > { %5890 = vmatprep.mubr.msk.bf16.mxu1 %vm829_vm4, %v6625_v17  ;;  %v3464_v17 = vsel %vm878_vm0, %v5019_v7, 0  ;;  %v4279_v8 = vsel %vm878_vm0, %v5121_v42, 0 }
 0x180   : > { %5755 = vmatmul.mubr.msk.bf16.vlgmr.msra.gmra.mrb[32].mxu0 %vm829_vm4, %v7075_v10 }
 0x181   : > { %5891 = vmatmul.mubr.msk.bf16.vlgmr.msra.gmra.mrb[32].mxu1 %vm829_vm4, %v6670_v59  ;;  %5787 = vmatpush3.bf16.msra.mxu0 %v3234_v22 }
 0x182   : > { %5923 = vmatpush3.bf16.msra.mxu1 %v4065_v35  ;;  %5894 = vmatprep.mubr.msk.bf16.mxu1 %vm829_vm4, %v6694_v24 }
 0x183   : > { %5758 = vmatprep.mubr.msk.bf16.mxu0 %vm829_vm4, %v7094_v30  ;;  %6385 = vmatprep.subr.msk.bf16.mxu0 %vm878_vm0, %v5019_v7 }
 0x184   : > { %6389 = vmatprep.subr.msk.bf16.mxu1 %vm878_vm0, %v5121_v42 }
 0x188   : > { %5759 = vmatmul.mubr.msk.bf16.gmra.mrb[36].mxu0 %vm829_vm4, %v7099_v31 }
 0x189   : > { %5895 = vmatmul.mubr.msk.bf16.gmra.mrb[36].mxu1 %vm829_vm4, %v6724_v2  ;;  %5762 = vmatprep.mubr.msk.bf16.mxu0 %vm829_vm4, %v7111_v3 }
 0x18a   : > { %5898 = vmatprep.mubr.msk.bf16.mxu1 %vm829_vm4, %v8009_v4 }
 0x190   : > { %5763 = vmatmul.mubr.msk.bf16.gmra.mrb[40].mxu0 %vm829_vm4, %v7013_v51 }
 0x191   : > { %5899 = vmatmul.mubr.msk.bf16.gmra.mrb[40].mxu1 %vm829_vm4, %v8010_v11  ;;  %5766 = vmatprep.mubr.msk.bf16.mxu0 %vm829_vm4, %v7021_v16 }
 0x192   : > { %5902 = vmatprep.mubr.msk.bf16.mxu1 %vm829_vm4, %v8011_v21 }
 0x198   : > { %5767 = vmatmul.mubr.msk.bf16.gmra.mrb[44].mxu0 %vm829_vm4, %v7025_v55 }
 0x199   : > { %5903 = vmatmul.mubr.msk.bf16.gmra.mrb[44].mxu1 %vm829_vm4, %v8012_v26  ;;  %5770 = vmatprep.mubr.msk.bf16.mxu0 %vm829_vm4, %v7031_v9 }
 0x19a   : > { %5906 = vmatprep.mubr.msk.bf16.mxu1 %vm829_vm4, %v8013_v44 }
 0x1a0   : > { %5771 = vmatmul.mubr.msk.bf16.gmra.mrb[48].mxu0 %vm829_vm4, %v7035_v58 }
 0x1a1   : > { %5907 = vmatmul.mubr.msk.bf16.gmra.mrb[48].mxu1 %vm829_vm4, %v8014_v54  ;;  %5774 = vmatprep.mubr.msk.bf16.mxu0 %vm829_vm4, %v7039_v1 }
 0x1a2   : > { %5910 = vmatprep.mubr.msk.bf16.mxu1 %vm829_vm4, %v8015_v15 }
 0x1a8   : > { %5775 = vmatmul.mubr.msk.bf16.gmra.mrb[52].mxu0 %vm829_vm4, %v7045_v36 }
 0x1a9   : > { %5911 = vmatmul.mubr.msk.bf16.gmra.mrb[52].mxu1 %vm829_vm4, %v8016_v29  ;;  %5778 = vmatprep.mubr.msk.bf16.mxu0 %vm829_vm4, %v7049_v41 }
 0x1aa   : > { %5914 = vmatprep.mubr.msk.bf16.mxu1 %vm829_vm4, %v8017_v52 }
 0x1b0   : > { %5779 = vmatmul.mubr.msk.bf16.gmra.mrb[56].mxu0 %vm829_vm4, %v7053_v20 }
 0x1b1   : > { %5915 = vmatmul.mubr.msk.bf16.gmra.mrb[56].mxu1 %vm829_vm4, %v6999_v0  ;;  %5782 = vmatprep.mubr.msk.bf16.mxu0 %vm829_vm4, %v7055_v32 }
 0x1b2   : > { %5918 = vmatprep.mubr.msk.bf16.mxu1 %vm829_vm4, %v7015_v18 }
 0x1b8   : > { %5783 = vmatmul.mubr.msk.bf16.gmra.mrb[60].mxu0 %vm829_vm4, %v7252_v14 }
 0x1b9   : > { %5919 = vmatmul.mubr.msk.bf16.gmra.mrb[60].mxu1 %vm829_vm4, %v7254_v25  ;;  %5788 = vmatprep.mubr.msk.bf16.mxu0 %vm829_vm4, %v7075_v10  ;;  %v7514_v10 = vld [vmem:[%s7930_s4] ss:$0 sm:$0xff] }
 0x1ba   : > { %5924 = vmatprep.mubr.msk.bf16.mxu1 %vm829_vm4, %v6670_v59 }
 0x1c0   : > { %5789 = vmatmul.mubr.msk.bf16.vlgmr.msra.gmra.mrb[32].mxu0 %vm829_vm4, %v7094_v30 }
 0x1c1   : > { %5925 = vmatmul.mubr.msk.bf16.vlgmr.msra.gmra.mrb[32].mxu1 %vm829_vm4, %v6694_v24  ;;  %5821 = vmatpush3.bf16.msra.mxu0 %v3464_v17 }
 0x1c2   : > { %5957 = vmatpush3.bf16.msra.mxu1 %v4279_v8  ;;  %5928 = vmatprep.mubr.msk.bf16.mxu1 %vm829_vm4, %v6724_v2  ;;  %v7558_v8 = vld [vmem:[%s7552_s30] sm:$0xf] }
 0x1c3   : > { %5792 = vmatprep.mubr.msk.bf16.mxu0 %vm829_vm4, %v7099_v31 }
 0x1c8   : > { %5793 = vmatmul.mubr.msk.bf16.gmra.mrb[36].mxu0 %vm829_vm4, %v7111_v3 }
 0x1c9   : > { %5929 = vmatmul.mubr.msk.bf16.gmra.mrb[36].mxu1 %vm829_vm4, %v8009_v4  ;;  %5796 = vmatprep.mubr.msk.bf16.mxu0 %vm829_vm4, %v7013_v51 }
 0x1ca   : > { %5932 = vmatprep.mubr.msk.bf16.mxu1 %vm829_vm4, %v8010_v11 }
 0x1d0   : > { %5797 = vmatmul.mubr.msk.bf16.gmra.mrb[40].mxu0 %vm829_vm4, %v7021_v16 }
 0x1d1   : > { %5933 = vmatmul.mubr.msk.bf16.gmra.mrb[40].mxu1 %vm829_vm4, %v8011_v21  ;;  %5800 = vmatprep.mubr.msk.bf16.mxu0 %vm829_vm4, %v7025_v55 }
 0x1d2   : > { %5936 = vmatprep.mubr.msk.bf16.mxu1 %vm829_vm4, %v8012_v26 }
 0x1d3   : > { %v5552_v51 = vpop.f32.mrb[0].mxu0 }
 0x1d4   : > { %v5688_v16 = vpop.f32.mrb[0].mxu1  ;;  %v1781_v55 = vadd.f32 %v5552_v51, %v7514_v10  ;;  %v1614_v30 = vpop.f32.mrb[1].mxu0 }
 0x1d5   : > { %v2822_v31 = vadd.f32 %v5688_v16, %v7514_v10  ;;  %v2661_v3 = vpop.f32.mrb[1].mxu1  ;;  %v1779_v43 = vadd.f32 %v7514_v10, %v1614_v30  ;;  %v5553_v49 = vpop.f32.mrb[2].mxu0 }
 0x1d6   : > { %v2820_v61 = vadd.f32 %v7514_v10, %v2661_v3  ;;  %v5689_v19 = vpop.f32.mrb[2].mxu1  ;;  %1813 = vst [vmem:[%s7521_s27 + $0x10] sm:$0xff] %v1781_v55  ;;  %v1782_v27 = vadd.f32 %v5553_v49, %v7514_v10  ;;  %v1617_v39 = vpop.f32.mrb[3].mxu0 }
 0x1d7   : > { %4937 = vst [vmem:[%s7521_s27 + $0x110] sm:$0xff] %v2822_v31  ;;  %v2823_v60 = vadd.f32 %v5689_v19, %v7514_v10  ;;  %v2664_v37 = vpop.f32.mrb[3].mxu1  ;;  %1811 = vst [vmem:[%s7521_s27] sm:$0xff] %v1779_v43  ;;  %v1780_v38 = vadd.f32 %v7514_v10, %v1617_v39  ;;  %v7564_v31 = vld [vmem:[%s7552_s30 + $0x4] sm:$0xf]  ;;  %v3430_v19 = vshrl.u32 %v7558_v8, 16 }
 0x1d8   : > { %4935 = vst [vmem:[%s7521_s27 + $0x100] sm:$0xff] %v2820_v61  ;;  %v2821_v63 = vadd.f32 %v7514_v10, %v2664_v37  ;;  %1814 = vst [vmem:[%s7521_s27 + $0x18] sm:$0xff] %v1782_v27  ;;  %5801 = vmatmul.mubr.msk.bf16.gmra.mrb[44].mxu0 %vm829_vm4, %v7031_v9  ;;  %v3433_v27 = vshll.u32 %v7558_v8, 16  ;;  %v3439_v39 = vshll.u32 %v7564_v31, 16 }
 0x1d9   : > { %4938 = vst [vmem:[%s7521_s27 + $0x118] sm:$0xff] %v2823_v60  ;;  %5937 = vmatmul.mubr.msk.bf16.gmra.mrb[44].mxu1 %vm829_vm4, %v8013_v44  ;;  %1812 = vst [vmem:[%s7521_s27 + $0x8] sm:$0xff] %v1780_v38  ;;  %5804 = vmatprep.mubr.msk.bf16.mxu0 %vm829_vm4, %v7035_v58 }
 0x1da   : > { %4936 = vst [vmem:[%s7521_s27 + $0x108] sm:$0xff] %v2821_v63  ;;  %5940 = vmatprep.mubr.msk.bf16.mxu1 %vm829_vm4, %v8014_v54 }
 0x1db   : > { %v5556_v9 = vpop.f32.mrb[4].mxu0 }
 0x1dc   : > { %v5692_v34 = vpop.f32.mrb[4].mxu1  ;;  %v1785_v22 = vadd.f32 %v5556_v9, %v7514_v10  ;;  %v1630_v35 = vpop.f32.mrb[5].mxu0 }
 0x1dd   : > { %v2826_v58 = vadd.f32 %v5692_v34, %v7514_v10  ;;  %v2677_v7 = vpop.f32.mrb[5].mxu1  ;;  %v1783_v42 = vadd.f32 %v7514_v10, %v1630_v35  ;;  %v5557_v17 = vpop.f32.mrb[6].mxu0  ;;  %v3432_v35 = vrot.slane %v3430_v19, 4 }
 0x1de   : > { %v2824_v51 = vadd.f32 %v7514_v10, %v2677_v7  ;;  %v5693_v16 = vpop.f32.mrb[6].mxu1  ;;  %1817 = vst [vmem:[%s7521_s27 + $0x30] sm:$0xff] %v1785_v22  ;;  %v1786_v55 = vadd.f32 %v5557_v17, %v7514_v10  ;;  %v1633_v30 = vpop.f32.mrb[7].mxu0 }
 0x1df   : > { %4941 = vst [vmem:[%s7521_s27 + $0x130] sm:$0xff] %v2826_v58  ;;  %v2827_v3 = vadd.f32 %v5693_v16, %v7514_v10  ;;  %v2680_v43 = vpop.f32.mrb[7].mxu1  ;;  %1815 = vst [vmem:[%s7521_s27 + $0x20] sm:$0xff] %v1783_v42  ;;  %v1784_v49 = vadd.f32 %v7514_v10, %v1633_v30  ;;  %v3435_v58 = vrot.slane %v3433_v27, 5  ;;  %v7594_v16 = vrot.slane %v3439_v39, 5 }
 0x1e0   : > { %4939 = vst [vmem:[%s7521_s27 + $0x120] sm:$0xff] %v2824_v51  ;;  %v2825_v61 = vadd.f32 %v7514_v10, %v2680_v43  ;;  %1818 = vst [vmem:[%s7521_s27 + $0x38] sm:$0xff] %v1786_v55  ;;  %5805 = vmatmul.mubr.msk.bf16.gmra.mrb[48].mxu0 %vm829_vm4, %v7039_v1  ;;  %v3443_v1 = vshrl.u32 %v7564_v31, 16 }
 0x1e1   : > { %4942 = vst [vmem:[%s7521_s27 + $0x138] sm:$0xff] %v2827_v3  ;;  %5941 = vmatmul.mubr.msk.bf16.gmra.mrb[48].mxu1 %vm829_vm4, %v8015_v15  ;;  %1816 = vst [vmem:[%s7521_s27 + $0x28] sm:$0xff] %v1784_v49  ;;  %5808 = vmatprep.mubr.msk.bf16.mxu0 %vm829_vm4, %v7045_v36  ;;  %v7601_v49 = vld [vmem:[%s7552_s30 + $0x8] sm:$0x1]  ;;  %v3436_v19 = vor.u32 %v3435_v58, %v3432_v35 }
 0x1e2   : > { %4940 = vst [vmem:[%s7521_s27 + $0x128] sm:$0xff] %v2825_v61  ;;  %5944 = vmatprep.mubr.msk.bf16.mxu1 %vm829_vm4, %v8016_v29  ;;  %v3445_v55 = vrot.slane %v3443_v1, 4  ;;  %v3449_v39 = vshll.u32 %v7601_v49, 16 }
 0x1e3   : > { %v5560_v60 = vpop.f32.mrb[8].mxu0 }
 0x1e4   : > { %v5696_v37 = vpop.f32.mrb[8].mxu1  ;;  %v1789_v38 = vadd.f32 %v5560_v60, %v7514_v10  ;;  %v1646_v63 = vpop.f32.mrb[9].mxu0  ;;  %v3446_v27 = vor.u32 %v3445_v55, %v7594_v16 }
 0x1e5   : > { %v2830_v36 = vadd.f32 %v5696_v37, %v7514_v10  ;;  %v2693_v9 = vpop.f32.mrb[9].mxu1  ;;  %v1787_v34 = vadd.f32 %v7514_v10, %v1646_v63  ;;  %v5561_v22 = vpop.f32.mrb[10].mxu0 }
 0x1e6   : > { %v2828_v7 = vadd.f32 %v7514_v10, %v2693_v9  ;;  %v5697_v42 = vpop.f32.mrb[10].mxu1  ;;  %1821 = vst [vmem:[%s7521_s27 + $0x50] sm:$0xff] %v1789_v38  ;;  %v1790_v17 = vadd.f32 %v5561_v22, %v7514_v10  ;;  %v1649_v51 = vpop.f32.mrb[11].mxu0  ;;  %v3437_v9 = vrot.slane %v3436_v19, 4 }
 0x1e7   : > { %4945 = vst [vmem:[%s7521_s27 + $0x150] sm:$0xff] %v2830_v36  ;;  %v2831_v30 = vadd.f32 %v5697_v42, %v7514_v10  ;;  %v2696_v3 = vpop.f32.mrb[11].mxu1  ;;  %1819 = vst [vmem:[%s7521_s27 + $0x40] sm:$0xff] %v1787_v34  ;;  %v1788_v43 = vadd.f32 %v7514_v10, %v1649_v51  ;;  %v3451_v42 = vrot.slane %v3449_v39, 5 }
 0x1e8   : > { %4943 = vst [vmem:[%s7521_s27 + $0x140] sm:$0xff] %v2828_v7  ;;  %v2829_v61 = vadd.f32 %v7514_v10, %v2696_v3  ;;  %1822 = vst [vmem:[%s7521_s27 + $0x58] sm:$0xff] %v1790_v17  ;;  %5809 = vmatmul.mubr.msk.bf16.gmra.mrb[52].mxu0 %vm829_vm4, %v7049_v41  ;;  %v3447_v7 = vrot.slane %v3446_v27, 4  ;;  %v3442_v3 = vsel %vm6585_vm7, %v3437_v9, %v7594_v16 }
 0x1e9   : > { %4946 = vst [vmem:[%s7521_s27 + $0x158] sm:$0xff] %v2831_v30  ;;  %5945 = vmatmul.mubr.msk.bf16.gmra.mrb[52].mxu1 %vm829_vm4, %v8017_v52  ;;  %1820 = vst [vmem:[%s7521_s27 + $0x48] sm:$0xff] %v1788_v43  ;;  %5812 = vmatprep.mubr.msk.bf16.mxu0 %vm829_vm4, %v7053_v20 }
 0x1ea   : > { %4944 = vst [vmem:[%s7521_s27 + $0x148] sm:$0xff] %v2829_v61  ;;  %5948 = vmatprep.mubr.msk.bf16.mxu1 %vm829_vm4, %v6999_v0 }
 0x1eb   : > { %v5564_v1 = vpop.f32.mrb[12].mxu0 }
 0x1ec   : > { %v5700_v41 = vpop.f32.mrb[12].mxu1  ;;  %v1793_v60 = vadd.f32 %v5564_v1, %v7514_v10  ;;  %v1662_v37 = vpop.f32.mrb[13].mxu0 }
 0x1ed   : > { %v2834_v38 = vadd.f32 %v5700_v41, %v7514_v10  ;;  %v2709_v20 = vpop.f32.mrb[13].mxu1  ;;  %v1791_v63 = vadd.f32 %v7514_v10, %v1662_v37  ;;  %v5565_v36 = vpop.f32.mrb[14].mxu0 }
 0x1ee   : > { %v2832_v34 = vadd.f32 %v7514_v10, %v2709_v20  ;;  %v5701_v22 = vpop.f32.mrb[14].mxu1  ;;  %1825 = vst [vmem:[%s7521_s27 + $0x70] sm:$0xff] %v1793_v60  ;;  %v1794_v35 = vadd.f32 %v5565_v36, %v7514_v10  ;;  %v1665_v58 = vpop.f32.mrb[15].mxu0 }
 0x1ef   : > { %4949 = vst [vmem:[%s7521_s27 + $0x170] sm:$0xff] %v2834_v38  ;;  %v2835_v17 = vadd.f32 %v5701_v22, %v7514_v10  ;;  %v2712_v51 = vpop.f32.mrb[15].mxu1  ;;  %1823 = vst [vmem:[%s7521_s27 + $0x60] sm:$0xff] %v1791_v63  ;;  %v1792_v55 = vadd.f32 %v7514_v10, %v1665_v58 }
 0x1f0   : > { %4947 = vst [vmem:[%s7521_s27 + $0x160] sm:$0xff] %v2832_v34  ;;  %v2833_v30 = vadd.f32 %v7514_v10, %v2712_v51  ;;  %1826 = vst [vmem:[%s7521_s27 + $0x78] sm:$0xff] %v1794_v35  ;;  %5813 = vmatmul.mubr.msk.bf16.gmra.mrb[56].mxu0 %vm829_vm4, %v7055_v32  ;;  %v3452_v32 = vsel %vm6585_vm7, %v3447_v7, %v3451_v42 }
 0x1f1   : > { %4950 = vst [vmem:[%s7521_s27 + $0x178] sm:$0xff] %v2835_v17  ;;  %5949 = vmatmul.mubr.msk.bf16.gmra.mrb[56].mxu1 %vm829_vm4, %v7015_v18  ;;  %1824 = vst [vmem:[%s7521_s27 + $0x68] sm:$0xff] %v1792_v55  ;;  %5816 = vmatprep.mubr.msk.bf16.mxu0 %vm829_vm4, %v7252_v14  ;;  %v5002_v14 = vcombine.low %v7558_v8, %v7564_v31  ;;  %v7653_v41 = vcombine.low %v3442_v3, %v3452_v32 }
 0x1f2   : > { %4948 = vst [vmem:[%s7521_s27 + $0x168] sm:$0xff] %v2833_v30  ;;  %5952 = vmatprep.mubr.msk.bf16.mxu1 %vm829_vm4, %v7254_v25 }
 0x1f3   : > { %v5568_v43 = vpop.f32.mrb[16].mxu0 }
 0x1f4   : > { %v5704_v61 = vpop.f32.mrb[16].mxu1  ;;  %v1797_v19 = vadd.f32 %v5568_v43, %v7514_v10  ;;  %v1678_v27 = vpop.f32.mrb[17].mxu0 }
 0x1f5   : > { %v2838_v39 = vadd.f32 %v5704_v61, %v7514_v10  ;;  %v2725_v1 = vpop.f32.mrb[17].mxu1  ;;  %v1795_v16 = vadd.f32 %v7514_v10, %v1678_v27  ;;  %v5569_v48 = vpop.f32.mrb[18].mxu0 }
 0x1f6   : > { %v2836_v60 = vadd.f32 %v7514_v10, %v2725_v1  ;;  %v5705_v37 = vpop.f32.mrb[18].mxu1  ;;  %1829 = vst [vmem:[%s7521_s27 + $0x90] sm:$0xff] %v1797_v19  ;;  %v1798_v38 = vadd.f32 %v5569_v48, %v7514_v10  ;;  %v1681_v20 = vpop.f32.mrb[19].mxu0 }
 0x1f7   : > { %4953 = vst [vmem:[%s7521_s27 + $0x190] sm:$0xff] %v2838_v39  ;;  %v2839_v63 = vadd.f32 %v5705_v37, %v7514_v10  ;;  %v2728_v36 = vpop.f32.mrb[19].mxu1  ;;  %1827 = vst [vmem:[%s7521_s27 + $0x80] sm:$0xff] %v1795_v16  ;;  %v1796_v9 = vadd.f32 %v7514_v10, %v1681_v20 }
 0x1f8   : > { %4951 = vst [vmem:[%s7521_s27 + $0x180] sm:$0xff] %v2836_v60  ;;  %v2837_v34 = vadd.f32 %v7514_v10, %v2728_v36  ;;  %1830 = vst [vmem:[%s7521_s27 + $0x98] sm:$0xff] %v1798_v38  ;;  %5817 = vmatmul.mubr.msk.bf16.gmra.mrb[60].mxu0 %vm829_vm4, %v5002_v14 }
 0x1f9   : > { %4954 = vst [vmem:[%s7521_s27 + $0x198] sm:$0xff] %v2839_v63  ;;  %5953 = vmatmul.mubr.msk.bf16.gmra.mrb[60].mxu1 %vm829_vm4, %v7653_v41  ;;  %1828 = vst [vmem:[%s7521_s27 + $0x88] sm:$0xff] %v1796_v9  ;;  %5822 = vmatprep.mubr.msk.bf16.mxu0 %vm829_vm4, %v6670_v59 }
 0x1fa   : > { %4952 = vst [vmem:[%s7521_s27 + $0x188] sm:$0xff] %v2837_v34  ;;  %5958 = vmatprep.mubr.msk.bf16.mxu1 %vm829_vm4, %v8019_v57 }
 0x1fb   : > { %v5572_v22 = vpop.f32.mrb[20].mxu0 }
 0x1fc   : > { %v5708_v35 = vpop.f32.mrb[20].mxu1  ;;  %v1801_v58 = vadd.f32 %v5572_v22, %v7514_v10  ;;  %v1694_v7 = vpop.f32.mrb[21].mxu0 }
 0x1fd   : > { %v2842_v42 = vadd.f32 %v5708_v35, %v7514_v10  ;;  %v2741_v17 = vpop.f32.mrb[21].mxu1  ;;  %v1799_v51 = vadd.f32 %v7514_v10, %v1694_v7  ;;  %v5573_v59 = vpop.f32.mrb[22].mxu0 }
 0x1fe   : > { %v2840_v55 = vadd.f32 %v7514_v10, %v2741_v17  ;;  %v5709_v30 = vpop.f32.mrb[22].mxu1  ;;  %1833 = vst [vmem:[%s7521_s27 + $0xb0] sm:$0xff] %v1801_v58  ;;  %v1802_v57 = vadd.f32 %v5573_v59, %v7514_v10  ;;  %v1697_v3 = vpop.f32.mrb[23].mxu0 }
 0x1ff   : > { %4957 = vst [vmem:[%s7521_s27 + $0x1b0] sm:$0xff] %v2842_v42  ;;  %v2843_v32 = vadd.f32 %v5709_v30, %v7514_v10  ;;  %v2744_v43 = vpop.f32.mrb[23].mxu1  ;;  %1831 = vst [vmem:[%s7521_s27 + $0xa0] sm:$0xff] %v1799_v51  ;;  %v1800_v61 = vadd.f32 %v7514_v10, %v1697_v3 }
 0x200   : > { %4955 = vst [vmem:[%s7521_s27 + $0x1a0] sm:$0xff] %v2840_v55  ;;  %v2841_v19 = vadd.f32 %v7514_v10, %v2744_v43  ;;  %1834 = vst [vmem:[%s7521_s27 + $0xb8] sm:$0xff] %v1802_v57  ;;  %5823 = vmatmul.mubr.msk.bf16.vlgmr.msra.gmra.mrb[32].mxu0 %vm829_vm4, %v6694_v24 }
 0x201   : > { %4958 = vst [vmem:[%s7521_s27 + $0x1b8] sm:$0xff] %v2843_v32  ;;  %5959 = vmatmul.mubr.msk.bf16.vlgmr.msra.gmra.mrb[32].mxu1 %vm829_vm4, %v8020_v47  ;;  %1832 = vst [vmem:[%s7521_s27 + $0xa8] sm:$0xff] %v1800_v61  ;;  %5826 = vmatprep.mubr.msk.bf16.mxu0 %vm829_vm4, %v6724_v2 }
 0x202   : > { %4956 = vst [vmem:[%s7521_s27 + $0x1a8] sm:$0xff] %v2841_v19  ;;  %5962 = vmatprep.mubr.msk.bf16.mxu1 %vm829_vm4, %v8021_v5 }
 0x203   : > { %v5576_v27 = vpop.f32.mrb[24].mxu0 }
 0x204   : > { %v5712_v14 = vpop.f32.mrb[24].mxu1  ;;  %v1805_v39 = vadd.f32 %v5576_v27, %v7514_v10  ;;  %v1710_v24 = vpop.f32.mrb[25].mxu0 }
 0x205   : > { %v2846_v1 = vadd.f32 %v5712_v14, %v7514_v10  ;;  %v2757_v47 = vpop.f32.mrb[25].mxu1  ;;  %v1803_v16 = vadd.f32 %v7514_v10, %v1710_v24  ;;  %v5577_v2 = vpop.f32.mrb[26].mxu0 }
 0x206   : > { %v2844_v48 = vadd.f32 %v7514_v10, %v2757_v47  ;;  %v5713_v60 = vpop.f32.mrb[26].mxu1  ;;  %1837 = vst [vmem:[%s7521_s27 + $0xd0] sm:$0xff] %v1805_v39  ;;  %v1806_v5 = vadd.f32 %v5577_v2, %v7514_v10  ;;  %v1713_v37 = vpop.f32.mrb[27].mxu0 }
 0x207   : > { %4961 = vst [vmem:[%s7521_s27 + $0x1d0] sm:$0xff] %v2846_v1  ;;  %v2847_v38 = vadd.f32 %v5713_v60, %v7514_v10  ;;  %v2760_v20 = vpop.f32.mrb[27].mxu1  ;;  %1835 = vst [vmem:[%s7521_s27 + $0xc0] sm:$0xff] %v1803_v16  ;;  %v1804_v63 = vadd.f32 %v7514_v10, %v1713_v37 }
 0x208   : > { %4959 = vst [vmem:[%s7521_s27 + $0x1c0] sm:$0xff] %v2844_v48  ;;  %v2845_v36 = vadd.f32 %v7514_v10, %v2760_v20  ;;  %1838 = vst [vmem:[%s7521_s27 + $0xd8] sm:$0xff] %v1806_v5  ;;  %5827 = vmatmul.mubr.msk.bf16.gmra.mrb[36].mxu0 %vm829_vm4, %v8009_v4 }
 0x209   : > { %4962 = vst [vmem:[%s7521_s27 + $0x1d8] sm:$0xff] %v2847_v38  ;;  %5963 = vmatmul.mubr.msk.bf16.gmra.mrb[36].mxu1 %vm829_vm4, %v8022_v12  ;;  %1836 = vst [vmem:[%s7521_s27 + $0xc8] sm:$0xff] %v1804_v63  ;;  %5830 = vmatprep.mubr.msk.bf16.mxu0 %vm829_vm4, %v8010_v11 }
 0x20a   : > { %4960 = vst [vmem:[%s7521_s27 + $0x1c8] sm:$0xff] %v2845_v36  ;;  %5966 = vmatprep.mubr.msk.bf16.mxu1 %vm829_vm4, %v8023_v40 }
 0x20b   : > { %v5580_v9 = vpop.f32.mrb[28].mxu0 }
 0x20c   : > { %v5716_v34 = vpop.f32.mrb[28].mxu1  ;;  %v1809_v22 = vadd.f32 %v5580_v9, %v7514_v10  ;;  %v1726_v4 = vpop.f32.mrb[29].mxu0 }
 0x20d   : > { %v2850_v35 = vadd.f32 %v5716_v34, %v7514_v10  ;;  %v2773_v12 = vpop.f32.mrb[29].mxu1  ;;  %v1807_v58 = vadd.f32 %v7514_v10, %v1726_v4  ;;  %v5581_v11 = vpop.f32.mrb[30].mxu0 }
 0x20e   : > { %v2848_v7 = vadd.f32 %v7514_v10, %v2773_v12  ;;  %v5717_v42 = vpop.f32.mrb[30].mxu1  ;;  %1841 = vst [vmem:[%s7521_s27 + $0xf0] sm:$0xff] %v1809_v22  ;;  %v1810_v40 = vadd.f32 %v5581_v11, %v7514_v10  ;;  %v1729_v17 = vpop.f32.mrb[31].mxu0 }
 0x20f   : > { %4965 = vst [vmem:[%s7521_s27 + $0x1f0] sm:$0xff] %v2850_v35  ;;  %v2851_v51 = vadd.f32 %v5717_v42, %v7514_v10  ;;  %v2776_v59 = vpop.f32.mrb[31].mxu1  ;;  %1839 = vst [vmem:[%s7521_s27 + $0xe0] sm:$0xff] %v1807_v58  ;;  %v1808_v55 = vadd.f32 %v7514_v10, %v1729_v17 }
 0x210   : > { %4963 = vst [vmem:[%s7521_s27 + $0x1e0] sm:$0xff] %v2848_v7  ;;  %v2849_v30 = vadd.f32 %v7514_v10, %v2776_v59  ;;  %1842 = vst [vmem:[%s7521_s27 + $0xf8] sm:$0xff] %v1810_v40  ;;  %5831 = vmatmul.mubr.msk.bf16.gmra.mrb[40].mxu0 %vm829_vm4, %v8011_v21  ;;  %v4263_v21 = vrot.slane %v7564_v31, 5 }
 0x211   : > { %4966 = vst [vmem:[%s7521_s27 + $0x1f8] sm:$0xff] %v2851_v51  ;;  %5967 = vmatmul.mubr.msk.bf16.gmra.mrb[40].mxu1 %vm829_vm4, %v8024_v53  ;;  %1840 = vst [vmem:[%s7521_s27 + $0xe8] sm:$0xff] %v1808_v55  ;;  %5834 = vmatprep.mubr.msk.bf16.mxu0 %vm829_vm4, %v8012_v26  ;;  %v5120_v26 = vrot.slane %v7558_v8, 9 }
 0x212   : > { %4964 = vst [vmem:[%s7521_s27 + $0x1e8] sm:$0xff] %v2849_v30  ;;  %5970 = vmatprep.mubr.msk.bf16.mxu1 %vm829_vm4, %v8025_v13 }
 0x218   : > { %5835 = vmatmul.mubr.msk.bf16.gmra.mrb[44].mxu0 %vm829_vm4, %v8013_v44  ;;  %v4265_v44 = vrot.slane %v4263_v21, 4 }
 0x219   : > { %5971 = vmatmul.mubr.msk.bf16.gmra.mrb[44].mxu1 %vm829_vm4, %v8026_v46  ;;  %5838 = vmatprep.mubr.msk.bf16.mxu0 %vm829_vm4, %v8014_v54  ;;  %v4266_v54 = vrot.slane %v7601_v49, 5 }
 0x21a   : > { %5974 = vmatprep.mubr.msk.bf16.mxu1 %vm829_vm4, %v8027_v50 }
 0x220   : > { %5839 = vmatmul.mubr.msk.bf16.gmra.mrb[48].mxu0 %vm829_vm4, %v8015_v15 }
 0x221   : > { %5975 = vmatmul.mubr.msk.bf16.gmra.mrb[48].mxu1 %vm829_vm4, %v8028_v56  ;;  %5842 = vmatprep.mubr.msk.bf16.mxu0 %vm829_vm4, %v8016_v29 }
 0x222   : > { %5978 = vmatprep.mubr.msk.bf16.mxu1 %vm829_vm4, %v8029_v45 }
 0x228   : > { %5843 = vmatmul.mubr.msk.bf16.gmra.mrb[52].mxu0 %vm829_vm4, %v8017_v52 }
 0x229   : > { %5979 = vmatmul.mubr.msk.bf16.gmra.mrb[52].mxu1 %vm829_vm4, %v8030_v28  ;;  %5846 = vmatprep.mubr.msk.bf16.mxu0 %vm829_vm4, %v6999_v0  ;;  %v4267_v0 = vsel %vm6537_vm3, %v4265_v44, %v4266_v54 }
 0x22a   : > { %5982 = vmatprep.mubr.msk.bf16.mxu1 %vm829_vm4, %v6997_v23  ;;  %v4264_v23 = vsel %vm6537_vm3, %v5120_v26, %v4263_v21 }
 0x22b   : > { %v5122_v15 = vcombine.low %v4264_v23, %v4267_v0 }
 0x230   : > { %5847 = vmatmul.mubr.msk.bf16.gmra.mrb[56].mxu0 %vm829_vm4, %v7015_v18 }
 0x231   : > { %5983 = vmatmul.mubr.msk.bf16.gmra.mrb[56].mxu1 %vm829_vm4, %v7027_v62  ;;  %5850 = vmatprep.mubr.msk.bf16.mxu0 %vm829_vm4, %v7254_v25 }
 0x232   : > { %5986 = vmatprep.mubr.msk.bf16.mxu1 %vm829_vm4, %v7166_v33 }
 0x238   : > { %5851 = vmatmul.mubr.msk.bf16.gmra.mrb[60].mxu0 %vm829_vm4, %v7653_v41 }
 0x239   : > { %5987 = vmatmul.mubr.msk.bf16.gmra.mrb[60].mxu1 %vm829_vm4, %v5122_v15 }
 0x2d3   : > { %v5824_v18 = vpop.f32.mrb[32].mxu0 }
 0x2d4   : > { %v5960_v62 = vpop.f32.mrb[32].mxu1  ;;  %v3661_v29 = vadd.f32 %v5824_v18, %v7514_v10  ;;  %v3500_v52 = vpop.f32.mrb[33].mxu0 }
 0x2d5   : > { %v4476_v33 = vadd.f32 %v5960_v62, %v7514_v10  ;;  %v4315_v25 = vpop.f32.mrb[33].mxu1  ;;  %v3659_v6 = vadd.f32 %v7514_v10, %v3500_v52  ;;  %v5825_v53 = vpop.f32.mrb[34].mxu0 }
 0x2d6   : > { %v4474_v13 = vadd.f32 %v7514_v10, %v4315_v25  ;;  %v5961_v46 = vpop.f32.mrb[34].mxu1  ;;  %5039 = vst [vmem:[%s7521_s27 + $0x210] sm:$0xff] %v3661_v29  ;;  %v3662_v50 = vadd.f32 %v5825_v53, %v7514_v10  ;;  %v3503_v56 = vpop.f32.mrb[35].mxu0 }
 0x2d7   : > { %5141 = vst [vmem:[%s7521_s27 + $0x310] sm:$0xff] %v4476_v33  ;;  %v4477_v45 = vadd.f32 %v5961_v46, %v7514_v10  ;;  %v4318_v28 = vpop.f32.mrb[35].mxu1  ;;  %5037 = vst [vmem:[%s7521_s27 + $0x200] sm:$0xff] %v3659_v6  ;;  %v3660_v8 = vadd.f32 %v7514_v10, %v3503_v56 }
 0x2d8   : > { %5139 = vst [vmem:[%s7521_s27 + $0x300] sm:$0xff] %v4474_v13  ;;  %v4475_v31 = vadd.f32 %v7514_v10, %v4318_v28  ;;  %5040 = vst [vmem:[%s7521_s27 + $0x218] sm:$0xff] %v3662_v50 }
 0x2d9   : > { %5142 = vst [vmem:[%s7521_s27 + $0x318] sm:$0xff] %v4477_v45  ;;  %5038 = vst [vmem:[%s7521_s27 + $0x208] sm:$0xff] %v3660_v8 }
 0x2da   : > { %5140 = vst [vmem:[%s7521_s27 + $0x308] sm:$0xff] %v4475_v31 }
 0x2db   : > { %v5828_v49 = vpop.f32.mrb[36].mxu0 }
 0x2dc   : > { %v5964_v41 = vpop.f32.mrb[36].mxu1  ;;  %v3665_v57 = vadd.f32 %v5828_v49, %v7514_v10  ;;  %v3516_v3 = vpop.f32.mrb[37].mxu0 }
 0x2dd   : > { %v4480_v32 = vadd.f32 %v5964_v41, %v7514_v10  ;;  %v4331_v43 = vpop.f32.mrb[37].mxu1  ;;  %v3663_v61 = vadd.f32 %v7514_v10, %v3516_v3  ;;  %v5829_v19 = vpop.f32.mrb[38].mxu0 }
 0x2de   : > { %v4478_v27 = vadd.f32 %v7514_v10, %v4331_v43  ;;  %v5965_v14 = vpop.f32.mrb[38].mxu1  ;;  %5043 = vst [vmem:[%s7521_s27 + $0x230] sm:$0xff] %v3665_v57  ;;  %v3666_v39 = vadd.f32 %v5829_v19, %v7514_v10  ;;  %v3519_v24 = vpop.f32.mrb[39].mxu0 }
 0x2df   : > { %5145 = vst [vmem:[%s7521_s27 + $0x330] sm:$0xff] %v4480_v32  ;;  %v4481_v1 = vadd.f32 %v5965_v14, %v7514_v10  ;;  %v4334_v47 = vpop.f32.mrb[39].mxu1  ;;  %5041 = vst [vmem:[%s7521_s27 + $0x220] sm:$0xff] %v3663_v61  ;;  %v3664_v16 = vadd.f32 %v7514_v10, %v3519_v24 }
 0x2e0   : > { %5143 = vst [vmem:[%s7521_s27 + $0x320] sm:$0xff] %v4478_v27  ;;  %v4479_v2 = vadd.f32 %v7514_v10, %v4334_v47  ;;  %5044 = vst [vmem:[%s7521_s27 + $0x238] sm:$0xff] %v3666_v39 }
 0x2e1   : > { %5146 = vst [vmem:[%s7521_s27 + $0x338] sm:$0xff] %v4481_v1  ;;  %5042 = vst [vmem:[%s7521_s27 + $0x228] sm:$0xff] %v3664_v16 }
 0x2e2   : > { %5144 = vst [vmem:[%s7521_s27 + $0x328] sm:$0xff] %v4479_v2 }
 0x2e3   : > { %v5832_v48 = vpop.f32.mrb[40].mxu0 }
 0x2e4   : > { %v5968_v60 = vpop.f32.mrb[40].mxu1  ;;  %v3669_v5 = vadd.f32 %v5832_v48, %v7514_v10  ;;  %v3532_v37 = vpop.f32.mrb[41].mxu0 }
 0x2e5   : > { %v4484_v38 = vadd.f32 %v5968_v60, %v7514_v10  ;;  %v4347_v20 = vpop.f32.mrb[41].mxu1  ;;  %v3667_v63 = vadd.f32 %v7514_v10, %v3532_v37  ;;  %v5833_v36 = vpop.f32.mrb[42].mxu0 }
 0x2e6   : > { %v4482_v9 = vadd.f32 %v7514_v10, %v4347_v20  ;;  %v5969_v34 = vpop.f32.mrb[42].mxu1  ;;  %5047 = vst [vmem:[%s7521_s27 + $0x250] sm:$0xff] %v3669_v5  ;;  %v3670_v22 = vadd.f32 %v5833_v36, %v7514_v10  ;;  %v3535_v4 = vpop.f32.mrb[43].mxu0 }
 0x2e7   : > { %5149 = vst [vmem:[%s7521_s27 + $0x350] sm:$0xff] %v4484_v38  ;;  %v4485_v35 = vadd.f32 %v5969_v34, %v7514_v10  ;;  %v4350_v12 = vpop.f32.mrb[43].mxu1  ;;  %5045 = vst [vmem:[%s7521_s27 + $0x240] sm:$0xff] %v3667_v63  ;;  %v3668_v58 = vadd.f32 %v7514_v10, %v3535_v4 }
 0x2e8   : > { %5147 = vst [vmem:[%s7521_s27 + $0x340] sm:$0xff] %v4482_v9  ;;  %v4483_v11 = vadd.f32 %v7514_v10, %v4350_v12  ;;  %5048 = vst [vmem:[%s7521_s27 + $0x258] sm:$0xff] %v3670_v22 }
 0x2e9   : > { %5150 = vst [vmem:[%s7521_s27 + $0x358] sm:$0xff] %v4485_v35  ;;  %5046 = vst [vmem:[%s7521_s27 + $0x248] sm:$0xff] %v3668_v58 }
 0x2ea   : > { %5148 = vst [vmem:[%s7521_s27 + $0x348] sm:$0xff] %v4483_v11 }
 0x2eb   : > { %v5836_v7 = vpop.f32.mrb[44].mxu0 }
 0x2ec   : > { %v5972_v42 = vpop.f32.mrb[44].mxu1  ;;  %v3673_v40 = vadd.f32 %v5836_v7, %v7514_v10  ;;  %v3548_v17 = vpop.f32.mrb[45].mxu0 }
 0x2ed   : > { %v4488_v51 = vadd.f32 %v5972_v42, %v7514_v10  ;;  %v4363_v59 = vpop.f32.mrb[45].mxu1  ;;  %v3671_v55 = vadd.f32 %v7514_v10, %v3548_v17  ;;  %v5837_v30 = vpop.f32.mrb[46].mxu0 }
 0x2ee   : > { %v4486_v21 = vadd.f32 %v7514_v10, %v4363_v59  ;;  %v5973_v26 = vpop.f32.mrb[46].mxu1  ;;  %5051 = vst [vmem:[%s7521_s27 + $0x270] sm:$0xff] %v3673_v40  ;;  %v3674_v44 = vadd.f32 %v5837_v30, %v7514_v10  ;;  %v3551_v54 = vpop.f32.mrb[47].mxu0 }
 0x2ef   : > { %5153 = vst [vmem:[%s7521_s27 + $0x370] sm:$0xff] %v4488_v51  ;;  %v4489_v23 = vadd.f32 %v5973_v26, %v7514_v10  ;;  %v4366_v0 = vpop.f32.mrb[47].mxu1  ;;  %5049 = vst [vmem:[%s7521_s27 + $0x260] sm:$0xff] %v3671_v55  ;;  %v3672_v15 = vadd.f32 %v7514_v10, %v3551_v54 }
 0x2f0   : > { %5151 = vst [vmem:[%s7521_s27 + $0x360] sm:$0xff] %v4486_v21  ;;  %v4487_v18 = vadd.f32 %v7514_v10, %v4366_v0  ;;  %5052 = vst [vmem:[%s7521_s27 + $0x278] sm:$0xff] %v3674_v44 }
 0x2f1   : > { %5154 = vst [vmem:[%s7521_s27 + $0x378] sm:$0xff] %v4489_v23  ;;  %5050 = vst [vmem:[%s7521_s27 + $0x268] sm:$0xff] %v3672_v15 }
 0x2f2   : > { %5152 = vst [vmem:[%s7521_s27 + $0x368] sm:$0xff] %v4487_v18 }
 0x2f3   : > { %v5840_v62 = vpop.f32.mrb[48].mxu0 }
 0x2f4   : > { %v5976_v29 = vpop.f32.mrb[48].mxu1  ;;  %v3677_v52 = vadd.f32 %v5840_v62, %v7514_v10  ;;  %v3564_v33 = vpop.f32.mrb[49].mxu0 }
 0x2f5   : > { %v4492_v25 = vadd.f32 %v5976_v29, %v7514_v10  ;;  %v4379_v6 = vpop.f32.mrb[49].mxu1  ;;  %v3675_v53 = vadd.f32 %v7514_v10, %v3564_v33  ;;  %v5841_v13 = vpop.f32.mrb[50].mxu0 }
 0x2f6   : > { %v4490_v46 = vadd.f32 %v7514_v10, %v4379_v6  ;;  %v5977_v50 = vpop.f32.mrb[50].mxu1  ;;  %5055 = vst [vmem:[%s7521_s27 + $0x290] sm:$0xff] %v3677_v52  ;;  %v3678_v56 = vadd.f32 %v5841_v13, %v7514_v10  ;;  %v3567_v45 = vpop.f32.mrb[51].mxu0 }
 0x2f7   : > { %5157 = vst [vmem:[%s7521_s27 + $0x390] sm:$0xff] %v4492_v25  ;;  %v4493_v28 = vadd.f32 %v5977_v50, %v7514_v10  ;;  %v4382_v8 = vpop.f32.mrb[51].mxu1  ;;  %5053 = vst [vmem:[%s7521_s27 + $0x280] sm:$0xff] %v3675_v53  ;;  %v3676_v31 = vadd.f32 %v7514_v10, %v3567_v45 }
 0x2f8   : > { %5155 = vst [vmem:[%s7521_s27 + $0x380] sm:$0xff] %v4490_v46  ;;  %v4491_v49 = vadd.f32 %v7514_v10, %v4382_v8  ;;  %5056 = vst [vmem:[%s7521_s27 + $0x298] sm:$0xff] %v3678_v56 }
 0x2f9   : > { %5158 = vst [vmem:[%s7521_s27 + $0x398] sm:$0xff] %v4493_v28  ;;  %5054 = vst [vmem:[%s7521_s27 + $0x288] sm:$0xff] %v3676_v31 }
 0x2fa   : > { %5156 = vst [vmem:[%s7521_s27 + $0x388] sm:$0xff] %v4491_v49 }
 0x2fb   : > { %v5844_v41 = vpop.f32.mrb[52].mxu0 }
 0x2fc   : > { %v5980_v57 = vpop.f32.mrb[52].mxu1  ;;  %v3681_v3 = vadd.f32 %v5844_v41, %v7514_v10  ;;  %v3580_v32 = vpop.f32.mrb[53].mxu0 }
 0x2fd   : > { %v4496_v43 = vadd.f32 %v5980_v57, %v7514_v10  ;;  %v4395_v61 = vpop.f32.mrb[53].mxu1  ;;  %v3679_v19 = vadd.f32 %v7514_v10, %v3580_v32  ;;  %v5845_v27 = vpop.f32.mrb[54].mxu0 }
 0x2fe   : > { %v4494_v14 = vadd.f32 %v7514_v10, %v4395_v61  ;;  %v5981_v39 = vpop.f32.mrb[54].mxu1  ;;  %5059 = vst [vmem:[%s7521_s27 + $0x2b0] sm:$0xff] %v3681_v3  ;;  %v3682_v24 = vadd.f32 %v5845_v27, %v7514_v10  ;;  %v3583_v1 = vpop.f32.mrb[55].mxu0 }
 0x2ff   : > { %5161 = vst [vmem:[%s7521_s27 + $0x3b0] sm:$0xff] %v4496_v43  ;;  %v4497_v47 = vadd.f32 %v5981_v39, %v7514_v10  ;;  %v4398_v16 = vpop.f32.mrb[55].mxu1  ;;  %5057 = vst [vmem:[%s7521_s27 + $0x2a0] sm:$0xff] %v3679_v19  ;;  %v3680_v2 = vadd.f32 %v7514_v10, %v3583_v1 }
 0x300   : > { %5159 = vst [vmem:[%s7521_s27 + $0x3a0] sm:$0xff] %v4494_v14  ;;  %v4495_v48 = vadd.f32 %v7514_v10, %v4398_v16  ;;  %5060 = vst [vmem:[%s7521_s27 + $0x2b8] sm:$0xff] %v3682_v24 }
 0x301   : > { %5162 = vst [vmem:[%s7521_s27 + $0x3b8] sm:$0xff] %v4497_v47  ;;  %5058 = vst [vmem:[%s7521_s27 + $0x2a8] sm:$0xff] %v3680_v2 }
 0x302   : > { %5160 = vst [vmem:[%s7521_s27 + $0x3a8] sm:$0xff] %v4495_v48 }
 0x303   : > { %v5848_v60 = vpop.f32.mrb[56].mxu0 }
 0x304   : > { %v5984_v5 = vpop.f32.mrb[56].mxu1  ;;  %v3685_v37 = vadd.f32 %v5848_v60, %v7514_v10  ;;  %v3596_v38 = vpop.f32.mrb[57].mxu0 }
 0x305   : > { %v4500_v20 = vadd.f32 %v5984_v5, %v7514_v10  ;;  %v4411_v63 = vpop.f32.mrb[57].mxu1  ;;  %v3683_v36 = vadd.f32 %v7514_v10, %v3596_v38  ;;  %v5849_v9 = vpop.f32.mrb[58].mxu0 }
 0x306   : > { %v4498_v34 = vadd.f32 %v7514_v10, %v4411_v63  ;;  %v5985_v22 = vpop.f32.mrb[58].mxu1  ;;  %5063 = vst [vmem:[%s7521_s27 + $0x2d0] sm:$0xff] %v3685_v37  ;;  %v3686_v4 = vadd.f32 %v5849_v9, %v7514_v10  ;;  %v3599_v35 = vpop.f32.mrb[59].mxu0 }
 0x307   : > { %5165 = vst [vmem:[%s7521_s27 + $0x3d0] sm:$0xff] %v4500_v20  ;;  %v4501_v12 = vadd.f32 %v5985_v22, %v7514_v10  ;;  %v4414_v58 = vpop.f32.mrb[59].mxu1  ;;  %5061 = vst [vmem:[%s7521_s27 + $0x2c0] sm:$0xff] %v3683_v36  ;;  %v3684_v11 = vadd.f32 %v7514_v10, %v3599_v35 }
 0x308   : > { %5163 = vst [vmem:[%s7521_s27 + $0x3c0] sm:$0xff] %v4498_v34  ;;  %v4499_v7 = vadd.f32 %v7514_v10, %v4414_v58  ;;  %5064 = vst [vmem:[%s7521_s27 + $0x2d8] sm:$0xff] %v3686_v4 }
 0x309   : > { %5166 = vst [vmem:[%s7521_s27 + $0x3d8] sm:$0xff] %v4501_v12  ;;  %5062 = vst [vmem:[%s7521_s27 + $0x2c8] sm:$0xff] %v3684_v11 }
 0x30a   : > { %5164 = vst [vmem:[%s7521_s27 + $0x3c8] sm:$0xff] %v4499_v7 }
 0x30b   : > { %v5852_v42 = vpop.f32.mrb[60].mxu0 }
 0x30c   : > { %v5988_v40 = vpop.f32.mrb[60].mxu1  ;;  %v3689_v17 = vadd.f32 %v5852_v42, %v7514_v10  ;;  %v3612_v51 = vpop.f32.mrb[61].mxu0 }
 0x30d   : > { %v4504_v59 = vadd.f32 %v5988_v40, %v7514_v10  ;;  %v4427_v55 = vpop.f32.mrb[61].mxu1  ;;  %v3687_v30 = vadd.f32 %v7514_v10, %v3612_v51  ;;  %v5853_v21 = vpop.f32.mrb[62].mxu0 }
 0x30e   : > { %v4502_v26 = vadd.f32 %v7514_v10, %v4427_v55  ;;  %v5989_v44 = vpop.f32.mrb[62].mxu1  ;;  %5067 = vst [vmem:[%s7521_s27 + $0x2f0] sm:$0xff] %v3689_v17  ;;  %v3690_v54 = vadd.f32 %v5853_v21, %v7514_v10  ;;  %v3615_v23 = vpop.f32.mrb[63].mxu0 }
 0x30f   : > { %5169 = vst [vmem:[%s7521_s27 + $0x3f0] sm:$0xff] %v4504_v59  ;;  %v4505_v0 = vadd.f32 %v5989_v44, %v7514_v10  ;;  %v4430_v15 = vpop.f32.mrb[63].mxu1  ;;  %5065 = vst [vmem:[%s7521_s27 + $0x2e0] sm:$0xff] %v3687_v30  ;;  %v3688_v18 = vadd.f32 %v7514_v10, %v3615_v23 }
 0x310   : > { %5167 = vst [vmem:[%s7521_s27 + $0x3e0] sm:$0xff] %v4502_v26  ;;  %v4503_v62 = vadd.f32 %v7514_v10, %v4430_v15  ;;  %5068 = vst [vmem:[%s7521_s27 + $0x2f8] sm:$0xff] %v3690_v54 }
 0x311   : > { %5170 = vst [vmem:[%s7521_s27 + $0x3f8] sm:$0xff] %v4505_v0  ;;  %5066 = vst [vmem:[%s7521_s27 + $0x2e8] sm:$0xff] %v3688_v18 }
 0x312   : > { %5168 = vst [vmem:[%s7521_s27 + $0x3e8] sm:$0xff] %v4503_v62 }
 0x313 PF: > { %s15_s20 = sadd.s32 1, %s6456_s20   ;;  %s8031_s18 = smov %s6452_s19 }
 0x314   : > { %p12_p6 = scmp.ge.s32.totalorder %s15_s20, 4   ;;  %s8032_s19 = smov %s8034_s21 }
 0x316   :  { %14 = sbr.rel (!%p12_p6) target bundleno = 2 (0x2), region = 96 }

</bundles_post_ra>
